<compile_context>
chip_gen: v7x
topology: tpu7x:2x2x1
jax: 0.10.0
libtpu: 0.0.40
codegen_flags: <defaults>
</compile_context>

<pallas_src>
import jax
import jax.numpy as jnp
from jax import lax
from jax.experimental import pallas as pl
from jax.experimental.pallas import tpu as pltpu

IN_FEATURES = 10
HIDDEN = 10000
OUT_FEATURES = 5
TILE_H = 2048                                        # in-kernel hidden chunk (multiple of 128)
HIDDEN_PADDED = pl.cdiv(HIDDEN, TILE_H) * TILE_H     # 10240

BIAS_COL = IN_FEATURES                               # x_aug column that is constant 1.0
W1_ROWS = 16                                         # rows 0..9 = W1, row 10 = b1, 11..15 = 0
W2_ROW0 = 16                                         # rows 16..20 = W2^T, 21..31 = 0
PACK_ROWS = 32                                       # packed weight sublane extent (bf16-tile aligned)


def _mlp_kernel(x_ref, w_ref, b2_ref, o_ref):
    """Single grid step: o = relu(x_aug @ [W1;b1]) @ W2^T + b2, chunked over H in-kernel.

    x_ref : [B, 16]  f32   (x | 1.0 | zeros)
    w_ref : [32, Hp] bf16  packed weights (lane-dense along Hp)
    b2_ref: [1, 5]   f32
    o_ref : [B, 5]
    """
    B = x_ref.shape[0]
    n_chunks = w_ref.shape[1] // TILE_H

    x_bf = x_ref[...].astype(jnp.bfloat16)            # [B, 16]

    def body(k, acc):
        off = pl.multiple_of(k * TILE_H, TILE_H)
        w1c = w_ref[pl.ds(0, W1_ROWS), pl.ds(off, TILE_H)]               # [16, TILE_H] bf16
        w2c = w_ref[pl.ds(W2_ROW0, OUT_FEATURES), pl.ds(off, TILE_H)]    # [5, TILE_H]  bf16
        # First matmul: bias is row 10 of w1c, picked up by the 1.0 column of x_bf.
        h = jnp.dot(x_bf, w1c, preferred_element_type=jnp.float32)       # [B, TILE_H] f32
        h = jnp.maximum(h, 0.0)                                          # ReLU
        # Second matmul: contract over the (lane-dense) last dim of both operands.
        return acc + lax.dot_general(
            h.astype(jnp.bfloat16), w2c,
            dimension_numbers=(((1,), (1,)), ((), ())),
            preferred_element_type=jnp.float32)                          # [B, 5] f32

    acc = lax.fori_loop(
        0, n_chunks, body, jnp.zeros((B, OUT_FEATURES), jnp.float32), unroll=True
    )
    o_ref[...] = (acc + b2_ref[...]).astype(o_ref.dtype)


@jax.jit
def toy_model_forward(x, wpack, b2p):
    """x: [B, 10] f32; wpack: [32, Hp] bf16 (see prepare_params); b2p: [1, 5] f32."""
    B = x.shape[0]
    Hp = wpack.shape[1]
    # Augment x with the bias column (1.0) and zero-fill to the 16-sublane tile.
    x_aug = jnp.concatenate(
        [x,
         jnp.ones((B, 1), x.dtype),
         jnp.zeros((B, W1_ROWS - IN_FEATURES - 1), x.dtype)],
        axis=1)                                                          # [B, 16]
    return pl.pallas_call(
        _mlp_kernel,
        out_shape=jax.ShapeDtypeStruct((B, OUT_FEATURES), x.dtype),
        grid_spec=pltpu.PrefetchScalarGridSpec(
            num_scalar_prefetch=0,
            grid=(1,),
            in_specs=[
                pl.BlockSpec((B, W1_ROWS), lambda i: (0, 0)),            # x_aug (full)
                pl.BlockSpec((PACK_ROWS, Hp), lambda i: (0, 0)),         # packed weights (full)
                pl.BlockSpec((1, OUT_FEATURES), lambda i: (0, 0)),       # b2 (full)
            ],
            out_specs=pl.BlockSpec((B, OUT_FEATURES), lambda i: (0, 0)),
        ),
        compiler_params=pltpu.CompilerParams(
            dimension_semantics=("arbitrary",),
        ),
    )(x_aug, wpack, b2p)


def prepare_params(w1, b1, w2, b2):
    """One-time (outside jit): build the packed, lane-dense bf16 weight array.

    wpack layout ([32, Hp] bf16, Hp = HIDDEN_PADDED):
      rows  0..9  : W1            [10, Hp]   (hidden padded with zeros)
      row   10    : b1            [Hp]       (padded entries are zero -> padding stays exact)
      rows 11..15 : zeros
      rows 16..20 : W2^T          [5, Hp]    (lane-dense along the hidden dim)
      rows 21..31 : zeros
    """
    pad = HIDDEN_PADDED - HIDDEN
    w1p = jnp.pad(w1, ((0, 0), (0, pad)))                        # [10, Hp]
    b1p = jnp.pad(b1, ((0, pad),))                               # [Hp]
    w2tp = jnp.pad(w2, ((0, pad), (0, 0))).T                     # [5, Hp]

    wpack = jnp.zeros((PACK_ROWS, HIDDEN_PADDED), jnp.float32)
    wpack = wpack.at[0:IN_FEATURES, :].set(w1p)
    wpack = wpack.at[BIAS_COL, :].set(b1p)
    wpack = wpack.at[W2_ROW0:W2_ROW0 + OUT_FEATURES, :].set(w2tp)
    wpack = wpack.astype(jnp.bfloat16)

    b2p = b2.reshape(1, OUT_FEATURES).astype(jnp.float32)
    return wpack, b2p


def init_params(key):
    """Deterministic init mimicking PyTorch nn.Linear (U(-1/sqrt(fan_in), +))."""
    k1, k2, k3, k4 = jax.random.split(key, 4)
    bound1 = 1.0 / jnp.sqrt(jnp.float32(IN_FEATURES))
    bound2 = 1.0 / jnp.sqrt(jnp.float32(HIDDEN))
    w1 = jax.random.uniform(k1, (IN_FEATURES, HIDDEN), jnp.float32, -bound1, bound1)
    b1 = jax.random.uniform(k2, (HIDDEN,), jnp.float32, -bound1, bound1)
    w2 = jax.random.uniform(k3, (HIDDEN, OUT_FEATURES), jnp.float32, -bound2, bound2)
    b2 = jax.random.uniform(k4, (OUT_FEATURES,), jnp.float32, -bound2, bound2)
    return w1, b1, w2, b2


if __name__ == "__main__":
    key = jax.random.PRNGKey(0)
    kp, kx = jax.random.split(key)
    w1, b1, w2, b2 = init_params(kp)
    wpack, b2p = prepare_params(w1, b1, w2, b2)        # once, outside jit

    B = 2
    x = jax.random.normal(kx, (B, IN_FEATURES), jnp.float32)

    out = toy_model_forward(x, wpack, b2p)
    out = jax.block_until_ready(out)
    assert out.shape == (B, OUT_FEATURES)

    # Reference 1: mirror the kernel's bf16 weight/activation quantization (tight check).
    xq = x.astype(jnp.bfloat16).astype(jnp.float32)
    w1q = w1.astype(jnp.bfloat16).astype(jnp.float32)
    b1q = b1.astype(jnp.bfloat16).astype(jnp.float32)
    w2q = w2.astype(jnp.bfloat16).astype(jnp.float32)
    h_ref = jnp.maximum(xq @ w1q + b1q, 0.0)
    ref_bf16 = h_ref.astype(jnp.bfloat16).astype(jnp.float32) @ w2q + b2
    assert jnp.allclose(out, ref_bf16, atol=3e-3, rtol=3e-3), "mismatch vs bf16-mirrored reference"

    # Reference 2: full-f32 PyTorch-equivalent forward (loose check; bf16 weights ~1e-2 rel err).
    ref_f32 = jnp.maximum(x @ w1 + b1, 0.0) @ w2 + b2
    assert jnp.allclose(out, ref_f32, atol=5e-2, rtol=5e-2), "mismatch vs f32 reference"

    print("KERNEL_OK")
</pallas_src>

<mosaic_0001>
module attributes {stable_mosaic.version = 11 : i64} {
  func.func @_mlp_kernel(%arg0: i32, %arg1: memref<2x16xf32, #tpu.memory_space<vmem>>, %arg2: memref<32x10240xbf16, #tpu.memory_space<vmem>>, %arg3: memref<1x5xf32, #tpu.memory_space<vmem>>, %arg4: memref<2x5xf32, #tpu.memory_space<vmem>>) attributes {dimension_semantics = [#tpu.dimension_semantics<arbitrary>], iteration_bounds = array<i64: 1>, scalar_prefetch = 0 : i64, scratch_operands = 0 : i64, tpu.core_type = #tpu.core_type<tc>, window_params = [{pipeline_mode = #tpu.pipeline_mode<synchronous>, transform_indices = @transform_0, window_bounds = array<i64: 2, 16>}, {pipeline_mode = #tpu.pipeline_mode<synchronous>, transform_indices = @transform_1, window_bounds = array<i64: 32, 10240>}, {pipeline_mode = #tpu.pipeline_mode<synchronous>, transform_indices = @transform_2, window_bounds = array<i64: 1, 5>}, {pipeline_mode = #tpu.pipeline_mode<synchronous>, transform_indices = @transform_3, window_bounds = array<i64: 2, 5>}]} {
    %c0 = arith.constant 0 : index
    %c0_0 = arith.constant 0 : index
    %0 = vector.load %arg1[%c0, %c0_0] : memref<2x16xf32, #tpu.memory_space<vmem>>, vector<2x16xf32>
    %1 = arith.truncf %0 : vector<2x16xf32> to vector<2x16xbf16>
    %cst = arith.constant 0.000000e+00 : f32
    %2 = vector.broadcast %cst : f32 to vector<2x5xf32>
    %c0_i32 = arith.constant 0 : i32
    %c2048_i32 = arith.constant 2048 : i32
    %3 = arith.muli %c0_i32, %c2048_i32 : i32
    %4 = tpu.assume_multiple %3, 2048 : i32
    %c0_1 = arith.constant 0 : index
    %5 = arith.index_cast %4 : i32 to index
    %6 = vector.load %arg2[%c0_1, %5] : memref<32x10240xbf16, #tpu.memory_space<vmem>>, vector<16x2048xbf16>
    %c16 = arith.constant 16 : index
    %7 = arith.index_cast %4 : i32 to index
    %8 = vector.load %arg2[%c16, %7] : memref<32x10240xbf16, #tpu.memory_space<vmem>>, vector<5x2048xbf16>
    %cst_2 = arith.constant dense<0.000000e+00> : vector<2x2048xf32>
    %9 = tpu.matmul %1, %6, %cst_2 {dimension_numbers = #tpu.dot_dimension_numbers<[1], [0], [0], [1], [0, 0, 1, 1], [], []>} : vector<2x16xbf16>, vector<16x2048xbf16>, vector<2x2048xf32> -> vector<2x2048xf32>
    %cst_3 = arith.constant 0.000000e+00 : f32
    %10 = vector.broadcast %cst_3 : f32 to vector<2x2048xf32>
    %11 = arith.maximumf %9, %10 : vector<2x2048xf32>
    %12 = arith.truncf %11 : vector<2x2048xf32> to vector<2x2048xbf16>
    %cst_4 = arith.constant dense<0.000000e+00> : vector<2x5xf32>
    %13 = tpu.matmul %12, %8, %cst_4 {dimension_numbers = #tpu.dot_dimension_numbers<[1], [1], [0], [0], [0, 0, 1, 0], [], []>} : vector<2x2048xbf16>, vector<5x2048xbf16>, vector<2x5xf32> -> vector<2x5xf32>
    %14 = arith.addf %2, %13 : vector<2x5xf32>
    %c1_i32 = arith.constant 1 : i32
    %c2048_i32_5 = arith.constant 2048 : i32
    %15 = arith.muli %c1_i32, %c2048_i32_5 : i32
    %16 = tpu.assume_multiple %15, 2048 : i32
    %c0_6 = arith.constant 0 : index
    %17 = arith.index_cast %16 : i32 to index
    %18 = vector.load %arg2[%c0_6, %17] : memref<32x10240xbf16, #tpu.memory_space<vmem>>, vector<16x2048xbf16>
    %c16_7 = arith.constant 16 : index
    %19 = arith.index_cast %16 : i32 to index
    %20 = vector.load %arg2[%c16_7, %19] : memref<32x10240xbf16, #tpu.memory_space<vmem>>, vector<5x2048xbf16>
    %cst_8 = arith.constant dense<0.000000e+00> : vector<2x2048xf32>
    %21 = tpu.matmul %1, %18, %cst_8 {dimension_numbers = #tpu.dot_dimension_numbers<[1], [0], [0], [1], [0, 0, 1, 1], [], []>} : vector<2x16xbf16>, vector<16x2048xbf16>, vector<2x2048xf32> -> vector<2x2048xf32>
    %cst_9 = arith.constant 0.000000e+00 : f32
    %22 = vector.broadcast %cst_9 : f32 to vector<2x2048xf32>
    %23 = arith.maximumf %21, %22 : vector<2x2048xf32>
    %24 = arith.truncf %23 : vector<2x2048xf32> to vector<2x2048xbf16>
    %cst_10 = arith.constant dense<0.000000e+00> : vector<2x5xf32>
    %25 = tpu.matmul %24, %20, %cst_10 {dimension_numbers = #tpu.dot_dimension_numbers<[1], [1], [0], [0], [0, 0, 1, 0], [], []>} : vector<2x2048xbf16>, vector<5x2048xbf16>, vector<2x5xf32> -> vector<2x5xf32>
    %26 = arith.addf %14, %25 : vector<2x5xf32>
    %c2_i32 = arith.constant 2 : i32
    %c2048_i32_11 = arith.constant 2048 : i32
    %27 = arith.muli %c2_i32, %c2048_i32_11 : i32
    %28 = tpu.assume_multiple %27, 2048 : i32
    %c0_12 = arith.constant 0 : index
    %29 = arith.index_cast %28 : i32 to index
    %30 = vector.load %arg2[%c0_12, %29] : memref<32x10240xbf16, #tpu.memory_space<vmem>>, vector<16x2048xbf16>
    %c16_13 = arith.constant 16 : index
    %31 = arith.index_cast %28 : i32 to index
    %32 = vector.load %arg2[%c16_13, %31] : memref<32x10240xbf16, #tpu.memory_space<vmem>>, vector<5x2048xbf16>
    %cst_14 = arith.constant dense<0.000000e+00> : vector<2x2048xf32>
    %33 = tpu.matmul %1, %30, %cst_14 {dimension_numbers = #tpu.dot_dimension_numbers<[1], [0], [0], [1], [0, 0, 1, 1], [], []>} : vector<2x16xbf16>, vector<16x2048xbf16>, vector<2x2048xf32> -> vector<2x2048xf32>
    %cst_15 = arith.constant 0.000000e+00 : f32
    %34 = vector.broadcast %cst_15 : f32 to vector<2x2048xf32>
    %35 = arith.maximumf %33, %34 : vector<2x2048xf32>
    %36 = arith.truncf %35 : vector<2x2048xf32> to vector<2x2048xbf16>
    %cst_16 = arith.constant dense<0.000000e+00> : vector<2x5xf32>
    %37 = tpu.matmul %36, %32, %cst_16 {dimension_numbers = #tpu.dot_dimension_numbers<[1], [1], [0], [0], [0, 0, 1, 0], [], []>} : vector<2x2048xbf16>, vector<5x2048xbf16>, vector<2x5xf32> -> vector<2x5xf32>
    %38 = arith.addf %26, %37 : vector<2x5xf32>
    %c3_i32 = arith.constant 3 : i32
    %c2048_i32_17 = arith.constant 2048 : i32
    %39 = arith.muli %c3_i32, %c2048_i32_17 : i32
    %40 = tpu.assume_multiple %39, 2048 : i32
    %c0_18 = arith.constant 0 : index
    %41 = arith.index_cast %40 : i32 to index
    %42 = vector.load %arg2[%c0_18, %41] : memref<32x10240xbf16, #tpu.memory_space<vmem>>, vector<16x2048xbf16>
    %c16_19 = arith.constant 16 : index
    %43 = arith.index_cast %40 : i32 to index
    %44 = vector.load %arg2[%c16_19, %43] : memref<32x10240xbf16, #tpu.memory_space<vmem>>, vector<5x2048xbf16>
    %cst_20 = arith.constant dense<0.000000e+00> : vector<2x2048xf32>
    %45 = tpu.matmul %1, %42, %cst_20 {dimension_numbers = #tpu.dot_dimension_numbers<[1], [0], [0], [1], [0, 0, 1, 1], [], []>} : vector<2x16xbf16>, vector<16x2048xbf16>, vector<2x2048xf32> -> vector<2x2048xf32>
    %cst_21 = arith.constant 0.000000e+00 : f32
    %46 = vector.broadcast %cst_21 : f32 to vector<2x2048xf32>
    %47 = arith.maximumf %45, %46 : vector<2x2048xf32>
    %48 = arith.truncf %47 : vector<2x2048xf32> to vector<2x2048xbf16>
    %cst_22 = arith.constant dense<0.000000e+00> : vector<2x5xf32>
    %49 = tpu.matmul %48, %44, %cst_22 {dimension_numbers = #tpu.dot_dimension_numbers<[1], [1], [0], [0], [0, 0, 1, 0], [], []>} : vector<2x2048xbf16>, vector<5x2048xbf16>, vector<2x5xf32> -> vector<2x5xf32>
    %50 = arith.addf %38, %49 : vector<2x5xf32>
    %c4_i32 = arith.constant 4 : i32
    %c2048_i32_23 = arith.constant 2048 : i32
    %51 = arith.muli %c4_i32, %c2048_i32_23 : i32
    %52 = tpu.assume_multiple %51, 2048 : i32
    %c0_24 = arith.constant 0 : index
    %53 = arith.index_cast %52 : i32 to index
    %54 = vector.load %arg2[%c0_24, %53] : memref<32x10240xbf16, #tpu.memory_space<vmem>>, vector<16x2048xbf16>
    %c16_25 = arith.constant 16 : index
    %55 = arith.index_cast %52 : i32 to index
    %56 = vector.load %arg2[%c16_25, %55] : memref<32x10240xbf16, #tpu.memory_space<vmem>>, vector<5x2048xbf16>
    %cst_26 = arith.constant dense<0.000000e+00> : vector<2x2048xf32>
    %57 = tpu.matmul %1, %54, %cst_26 {dimension_numbers = #tpu.dot_dimension_numbers<[1], [0], [0], [1], [0, 0, 1, 1], [], []>} : vector<2x16xbf16>, vector<16x2048xbf16>, vector<2x2048xf32> -> vector<2x2048xf32>
    %cst_27 = arith.constant 0.000000e+00 : f32
    %58 = vector.broadcast %cst_27 : f32 to vector<2x2048xf32>
    %59 = arith.maximumf %57, %58 : vector<2x2048xf32>
    %60 = arith.truncf %59 : vector<2x2048xf32> to vector<2x2048xbf16>
    %cst_28 = arith.constant dense<0.000000e+00> : vector<2x5xf32>
    %61 = tpu.matmul %60, %56, %cst_28 {dimension_numbers = #tpu.dot_dimension_numbers<[1], [1], [0], [0], [0, 0, 1, 0], [], []>} : vector<2x2048xbf16>, vector<5x2048xbf16>, vector<2x5xf32> -> vector<2x5xf32>
    %62 = arith.addf %50, %61 : vector<2x5xf32>
    %c5_i32 = arith.constant 5 : i32
    %c0_29 = arith.constant 0 : index
    %c0_30 = arith.constant 0 : index
    %63 = vector.load %arg3[%c0_29, %c0_30] : memref<1x5xf32, #tpu.memory_space<vmem>>, vector<1x5xf32>
    %64 = vector.broadcast %63 : vector<1x5xf32> to vector<2x5xf32>
    %65 = arith.addf %62, %64 : vector<2x5xf32>
    %c0_31 = arith.constant 0 : index
    %c0_32 = arith.constant 0 : index
    %66 = vector.load %arg4[%c0_31, %c0_32] : memref<2x5xf32, #tpu.memory_space<vmem>>, vector<2x5xf32>
    tpu.vector_store %arg4[%c0_31, %c0_32], %65 {strides = array<i32>} : memref<2x5xf32, #tpu.memory_space<vmem>>, vector<2x5xf32>,
    return
  }
  func.func @transform_0(%arg0: i32) -> (i32, i32) {
    %c0_i32 = arith.constant 0 : i32
    %c0_i32_0 = arith.constant 0 : i32
    %c0_i32_1 = arith.constant 0 : i32
    return %c0_i32, %c0_i32_0 : i32, i32
  }
  func.func @transform_1(%arg0: i32) -> (i32, i32) {
    %c0_i32 = arith.constant 0 : i32
    %c0_i32_0 = arith.constant 0 : i32
    %c0_i32_1 = arith.constant 0 : i32
    return %c0_i32, %c0_i32_0 : i32, i32
  }
  func.func @transform_2(%arg0: i32) -> (i32, i32) {
    %c0_i32 = arith.constant 0 : i32
    %c0_i32_0 = arith.constant 0 : i32
    %c0_i32_1 = arith.constant 0 : i32
    return %c0_i32, %c0_i32_0 : i32, i32
  }
  func.func @transform_3(%arg0: i32) -> (i32, i32) {
    %c0_i32 = arith.constant 0 : i32
    %c0_i32_0 = arith.constant 0 : i32
    %c0_i32_1 = arith.constant 0 : i32
    return %c0_i32, %c0_i32_0 : i32, i32
  }
}

</mosaic_0001>

<bundles_post_ra>
// kernel: toy_model_forward.1
= control target key start
LH: loop header
LB: loop body
LE: loop exit
PB: predicated region body
PF: predicated region fallthrough
CT: control target
= control target key end

     0   :  { %8 = vsyncpa [#allocation3], 0  ;;  %s4884_s0 = inlined_call_operand.vmem [shape: f32[2,16], index: 0, kind: input, shape index: {}]   ;;  %s4885_s1 = inlined_call_operand.hbm [shape: bf16[32,10240], index: 1, kind: input, shape index: {}]   ;;  %s4886_s2 = inlined_call_operand.vmem [shape: f32[1,5], index: 2, kind: input, shape index: {}]   ;;  %s4887_s3 = inlined_call_operand.hbm [shape: f32[2,5], index: 3, kind: output, shape index: {}]  }
   0x1   :  { %9 = vsyncpa [#allocation4], 0  ;;  %s4602_s12 = smov [#allocation2]   ;;  %s4554_s16 = scalar_lea.hbm %s4885_s1, 20480 }
   0x2   :  { %s17_s13 = sshll.u32 %s4602_s12, 4  ;;  %p4555_p0 = scmp.ne.s32.totalorder %s4885_s1, %s4554_s16  ;;  %s18_s13 = int_to_ptr.vmem [resolvable:$true] %s17_s13 }
   0x3   :  { %p4558_p1 = scmp.lt.u32.totalorder %s4554_s16, %s4885_s1 }
   0x5   :  { %p4560_p2 = pnand %p4558_p1, %p4555_p0 }
   0x7   :  { %4563 = shalt.err (!%p4560_p2)
}
   0x8   :  { %s4564_s21 = scalar_lea.vmem %s18_s13, 20480  ;;  %p4569_p4 = scmp.lt.s32.totalorder %s18_s13, %s18_s13 }
   0x9   :  { %p4565_p3 = scmp.ne.s32.totalorder %s18_s13, %s4564_s21  ;;  %p4570_p5 = scmp.lt.s32.totalorder %s4564_s21, %s4564_s21 }
   0xb   :  { %p4571_p6 = por %p4570_p5, %p4569_p4 }
   0xd   :  { %p4572_p7 = pnand %p4571_p6, %p4565_p3 }
   0xf   :  { %4575 = shalt.err (!%p4572_p7)
}
  0x10   :  { %s4603_s22 = smov 5120   ;;  %s4604_s23 = smov 320  }
  0x11   :  { %23 = dma.hbm_to_vmem [thread:$0]  %s4885_s1, 20480, %s18_s13, [#allocation3], %s4603_s22, %s4603_s22, %s4604_s23  }
  0x12   :  { %4598 = dma.done.wait [#allocation3], 20480  }
  0x13   :  { %4599 = vsyncadd [#allocation3], 4294946816  ;;  %v4605_v0 = vmov 0   ;;  %v32_v1 = vld [vmem:[#allocation2] sm:$0xff]  ;;  %v33_v3 = vld [vmem:[#allocation2 + $0x8] sm:$0xff]  ;;  %vm136_vm0 = vcmask 130048  }
  0x14   :  { %172 = vmatprep.mubr.bf16.mxu0 %v4605_v0  ;;  %213 = vmatprep.mubr.bf16.mxu1 %v4605_v0  ;;  %v40_v2 = vld [vmem:[#allocation2 + $0x140] sm:$0xff]  ;;  %v41_v5 = vld [vmem:[#allocation2 + $0x148] sm:$0xff]  ;;  %v34_v8 = vld [vmem:[#allocation2 + $0x10] sm:$0xff]  ;;  %s4606_s28 = smov [#allocation5]   ;;  %vm4251_vm1 = vcmask 33792  }
  0x15   :  { %v4269_v4 = vcombine.high %v32_v1, %v40_v2  ;;  %v4268_v6 = vcombine.low %v32_v1, %v40_v2  ;;  %v30_v7 = vld [vmem:[%s4884_s0] sm:$0x3]  ;;  %v4271_v9 = vcombine.high %v33_v3, %v41_v5  ;;  %v4270_v10 = vcombine.low %v33_v3, %v41_v5  ;;  %v42_v11 = vld [vmem:[#allocation2 + $0x150] sm:$0xff]  ;;  %v35_v12 = vld [vmem:[#allocation2 + $0x18] sm:$0xff]  ;;  %s4259_s29 = sshll.u32 %s4606_s28, 4  ;;  %s4260_s29 = int_to_ptr.vmem [resolvable:$true] %s4259_s29 }
  0x16   :  { %v43_v13 = vld [vmem:[#allocation2 + $0x158] sm:$0xff]  ;;  %v4644_v14 = vpack.c.bf16 %v30_v7, %v30_v7  ;;  %v4273_v15 = vcombine.high %v34_v8, %v42_v11  ;;  %v36_v17 = vld [vmem:[#allocation2 + $0x20] sm:$0xff]  ;;  %v4272_v19 = vcombine.low %v34_v8, %v42_v11  ;;  %v37_v20 = vld [vmem:[#allocation2 + $0x28] sm:$0xff]  ;;  %s4576_s30 = scalar_lea.vmem %s4260_s29, 32  ;;  %p4581_p9 = scmp.lt.s32.totalorder %s4260_s29, %s4260_s29 }
  0x17   :  { %140 = vmatprep.subr.bf16.mxu0 %v4269_v4  ;;  %v4275_v16 = vcombine.high %v35_v12, %v43_v13  ;;  %v44_v18 = vld [vmem:[#allocation2 + $0x160] sm:$0xff]  ;;  %181 = vmatprep.subr.bf16.mxu1 %v4271_v9  ;;  %v45_v21 = vld [vmem:[#allocation2 + $0x168] sm:$0xff]  ;;  %v4274_v22 = vcombine.low %v35_v12, %v43_v13  ;;  %v38_v25 = vld [vmem:[#allocation2 + $0x30] sm:$0xff]  ;;  %p4577_p8 = scmp.ne.s32.totalorder %s4260_s29, %s4576_s30  ;;  %p4582_p10 = scmp.lt.s32.totalorder %s4576_s30, %s4576_s30 }
  0x18   :  { %141 = vmatpush1.bf16.msra.mxu0 %v4268_v6  ;;  %182 = vmatpush1.bf16.msra.mxu1 %v4270_v10  ;;  %v4277_v23 = vcombine.high %v36_v17, %v44_v18  ;;  %v4279_v24 = vcombine.high %v37_v20, %v45_v21  ;;  %v46_v26 = vld [vmem:[#allocation2 + $0x170] sm:$0xff]  ;;  %v4276_v27 = vcombine.low %v36_v17, %v44_v18  ;;  %v39_v28 = vld [vmem:[#allocation2 + $0x38] sm:$0xff]  ;;  %v501_v33 = vld [vmem:[#allocation2 + $0x40] sm:$0xff] }
  0x19   :  { %222 = vmatprep.subr.bf16.mxu0 %v4273_v15  ;;  %263 = vmatprep.subr.bf16.mxu1 %v4275_v16  ;;  %v47_v29 = vld [vmem:[#allocation2 + $0x178] sm:$0xff]  ;;  %v4278_v30 = vcombine.low %v37_v20, %v45_v21  ;;  %v4281_v31 = vcombine.high %v38_v25, %v46_v26  ;;  %v509_v34 = vld [vmem:[#allocation2 + $0x180] sm:$0xff]  ;;  %v4280_v35 = vcombine.low %v38_v25, %v46_v26  ;;  %v502_v36 = vld [vmem:[#allocation2 + $0x48] sm:$0xff]  ;;  %p4583_p11 = por %p4582_p10, %p4581_p9 }
  0x1a   :  { %v4283_v32 = vcombine.high %v39_v28, %v47_v29  ;;  %v510_v37 = vld [vmem:[#allocation2 + $0x188] sm:$0xff]  ;;  %v4282_v38 = vcombine.low %v39_v28, %v47_v29  ;;  %v4293_v39 = vcombine.high %v501_v33, %v509_v34  ;;  %v503_v41 = vld [vmem:[#allocation2 + $0x50] sm:$0xff]  ;;  %v4292_v43 = vcombine.low %v501_v33, %v509_v34  ;;  %v504_v44 = vld [vmem:[#allocation2 + $0x58] sm:$0xff] }
  0x1b   :  { %4284 = vmatmul.mubr.msk.bf16.vlgmr.msra.gmra.mrb[0].mxu0 %vm136_vm0, %v4644_v14  ;;  %4285 = vmatmul.mubr.msk.bf16.vlgmr.msra.gmra.mrb[0].mxu1 %vm136_vm0, %v4644_v14  ;;  %v4295_v40 = vcombine.high %v502_v36, %v510_v37  ;;  %v511_v42 = vld [vmem:[#allocation2 + $0x190] sm:$0xff]  ;;  %v512_v45 = vld [vmem:[#allocation2 + $0x198] sm:$0xff]  ;;  %v4294_v46 = vcombine.low %v502_v36, %v510_v37  ;;  %v505_v49 = vld [vmem:[#allocation2 + $0x60] sm:$0xff]  ;;  %p4584_p12 = pnand %p4583_p11, %p4577_p8 }
  0x1c   :  { %223 = vmatpush1.bf16.msra.mxu0 %v4272_v19  ;;  %264 = vmatpush1.bf16.msra.mxu1 %v4274_v22  ;;  %v4297_v47 = vcombine.high %v503_v41, %v511_v42  ;;  %v4299_v48 = vcombine.high %v504_v44, %v512_v45  ;;  %v513_v50 = vld [vmem:[#allocation2 + $0x1a0] sm:$0xff]  ;;  %v4296_v51 = vcombine.low %v503_v41, %v511_v42  ;;  %v506_v52 = vld [vmem:[#allocation2 + $0x68] sm:$0xff]  ;;  %v507_v57 = vld [vmem:[#allocation2 + $0x70] sm:$0xff] }
  0x1d   :  { %254 = vmatprep.mubr.bf16.mxu0 %v4605_v0  ;;  %295 = vmatprep.mubr.bf16.mxu1 %v4605_v0  ;;  %v514_v53 = vld [vmem:[#allocation2 + $0x1a8] sm:$0xff]  ;;  %v4298_v54 = vcombine.low %v504_v44, %v512_v45  ;;  %v4301_v55 = vcombine.high %v505_v49, %v513_v50  ;;  %v515_v58 = vld [vmem:[#allocation2 + $0x1b0] sm:$0xff]  ;;  %v4300_v59 = vcombine.low %v505_v49, %v513_v50  ;;  %v508_v60 = vld [vmem:[#allocation2 + $0x78] sm:$0xff] }
  0x1e   :  { %304 = vmatprep.subr.bf16.mxu0 %v4277_v23  ;;  %345 = vmatprep.subr.bf16.mxu1 %v4279_v24  ;;  %v4303_v56 = vcombine.high %v506_v52, %v514_v53  ;;  %v516_v61 = vld [vmem:[#allocation2 + $0x1b8] sm:$0xff]  ;;  %v4302_v62 = vcombine.low %v506_v52, %v514_v53  ;;  %v4305_v63 = vcombine.high %v507_v57, %v515_v58  ;;  %v517_v4 = vld [vmem:[#allocation2 + $0x2c0] sm:$0x77]  ;;  %v518_v5 = vld [vmem:[#allocation2 + $0x2c8] sm:$0x77] }
  0x1f   :  { %v4307_v1 = vcombine.high %v508_v60, %v516_v61  ;;  %v4304_v2 = vcombine.low %v507_v57, %v515_v58  ;;  %v4306_v3 = vcombine.low %v508_v60, %v516_v61  ;;  %v4316_v6 = vcombine.low %v517_v4, %v517_v4  ;;  %v4692_v10 = vld [vmem:[#allocation2 + $0x2d0] sm:$0x77]  ;;  %v4694_v11 = vld [vmem:[#allocation2 + $0x2d8] sm:$0x77] }
  0x20   :  { %v4317_v7 = vcombine.high %v517_v4, %v517_v4  ;;  %v4318_v8 = vcombine.low %v518_v5, %v518_v5  ;;  %v4319_v9 = vcombine.high %v518_v5, %v518_v5  ;;  %v4321_v12 = vcombine.high %v4692_v10, %v4692_v10 }
  0x21   :  { %v4323_v13 = vcombine.high %v4694_v11, %v4694_v11 }
  0x23   :  { %4286 = vmatmul.mubr.msk.bf16.vlgmr.msra.gmra.mrb[4].mxu0 %vm136_vm0, %v4644_v14  ;;  %4287 = vmatmul.mubr.msk.bf16.vlgmr.msra.gmra.mrb[4].mxu1 %vm136_vm0, %v4644_v14 }
  0x24   :  { %305 = vmatpush1.bf16.msra.mxu0 %v4276_v27  ;;  %346 = vmatpush1.bf16.msra.mxu1 %v4278_v30 }
  0x25   :  { %336 = vmatprep.mubr.bf16.mxu0 %v4605_v0  ;;  %377 = vmatprep.mubr.bf16.mxu1 %v4605_v0 }
  0x26   :  { %386 = vmatprep.subr.bf16.mxu0 %v4281_v31  ;;  %427 = vmatprep.subr.bf16.mxu1 %v4283_v32 }
  0x2b   :  { %4288 = vmatmul.mubr.msk.bf16.vlgmr.msra.gmra.mrb[8].mxu0 %vm136_vm0, %v4644_v14  ;;  %4289 = vmatmul.mubr.msk.bf16.vlgmr.msra.gmra.mrb[8].mxu1 %vm136_vm0, %v4644_v14 }
  0x2c   :  { %387 = vmatpush1.bf16.msra.mxu0 %v4280_v35  ;;  %428 = vmatpush1.bf16.msra.mxu1 %v4282_v38 }
  0x2d   :  { %418 = vmatprep.mubr.bf16.mxu0 %v4605_v0  ;;  %459 = vmatprep.mubr.bf16.mxu1 %v4605_v0 }
  0x2e   :  { %605 = vmatprep.subr.bf16.mxu0 %v4293_v39  ;;  %646 = vmatprep.subr.bf16.mxu1 %v4295_v40 }
  0x33   :  { %4290 = vmatmul.mubr.msk.bf16.vlgmr.msra.gmra.mrb[12].mxu0 %vm136_vm0, %v4644_v14  ;;  %4291 = vmatmul.mubr.msk.bf16.vlgmr.msra.gmra.mrb[12].mxu1 %vm136_vm0, %v4644_v14 }
  0x34   :  { %606 = vmatpush1.bf16.msra.mxu0 %v4292_v43  ;;  %647 = vmatpush1.bf16.msra.mxu1 %v4294_v46 }
  0x35   :  { %637 = vmatprep.mubr.bf16.mxu0 %v4605_v0  ;;  %678 = vmatprep.mubr.bf16.mxu1 %v4605_v0 }
  0x36   :  { %687 = vmatprep.subr.bf16.mxu0 %v4297_v47  ;;  %728 = vmatprep.subr.bf16.mxu1 %v4299_v48 }
  0x3b   :  { %4308 = vmatmul.mubr.msk.bf16.vlgmr.msra.gmra.mrb[16].mxu0 %vm136_vm0, %v4644_v14  ;;  %4309 = vmatmul.mubr.msk.bf16.vlgmr.msra.gmra.mrb[16].mxu1 %vm136_vm0, %v4644_v14 }
  0x3c   :  { %688 = vmatpush1.bf16.msra.mxu0 %v4296_v51  ;;  %729 = vmatpush1.bf16.msra.mxu1 %v4298_v54 }
  0x3d   :  { %719 = vmatprep.mubr.bf16.mxu0 %v4605_v0  ;;  %760 = vmatprep.mubr.bf16.mxu1 %v4605_v0 }
  0x3e   :  { %769 = vmatprep.subr.bf16.mxu0 %v4301_v55  ;;  %810 = vmatprep.subr.bf16.mxu1 %v4303_v56  ;;  %v521_v55 = vld [vmem:[#allocation2 + $0x2e0] sm:$0x77] }
  0x3f   :  { %v4325_v4 = vcombine.high %v521_v55, %v521_v55 }
  0x43   :  { %4310 = vmatmul.mubr.msk.bf16.vlgmr.msra.gmra.mrb[20].mxu0 %vm136_vm0, %v4644_v14  ;;  %4311 = vmatmul.mubr.msk.bf16.vlgmr.msra.gmra.mrb[20].mxu1 %vm136_vm0, %v4644_v14 }
  0x44   :  { %770 = vmatpush1.bf16.msra.mxu0 %v4300_v59  ;;  %811 = vmatpush1.bf16.msra.mxu1 %v4302_v62  ;;  %v522_v59 = vld [vmem:[#allocation2 + $0x2e8] sm:$0x77] }
  0x45   :  { %801 = vmatprep.mubr.bf16.mxu0 %v4605_v0  ;;  %842 = vmatprep.mubr.bf16.mxu1 %v4605_v0  ;;  %v4327_v5 = vcombine.high %v522_v59, %v522_v59 }
  0x46   :  { %851 = vmatprep.subr.bf16.mxu0 %v4305_v63  ;;  %892 = vmatprep.subr.bf16.mxu1 %v4307_v1  ;;  %v4320_v63 = vcombine.low %v4692_v10, %v4692_v10 }
  0x4b   :  { %4312 = vmatmul.mubr.msk.bf16.vlgmr.msra.gmra.mrb[24].mxu0 %vm136_vm0, %v4644_v14  ;;  %4313 = vmatmul.mubr.msk.bf16.vlgmr.msra.gmra.mrb[24].mxu1 %vm136_vm0, %v4644_v14 }
  0x4c   :  { %852 = vmatpush1.bf16.msra.mxu0 %v4304_v2  ;;  %893 = vmatpush1.bf16.msra.mxu1 %v4306_v3  ;;  %v4322_v3 = vcombine.low %v4694_v11, %v4694_v11 }
  0x4d   :  { %883 = vmatprep.mubr.bf16.mxu0 %v4605_v0  ;;  %924 = vmatprep.mubr.bf16.mxu1 %v4605_v0 }
  0x4e   :  { %1021 = vmatprep.subr.bf16.mxu0 %v4317_v7  ;;  %1061 = vmatprep.subr.bf16.mxu1 %v4319_v9 }
  0x53   :  { %4314 = vmatmul.mubr.msk.bf16.vlgmr.msra.gmra.mrb[28].mxu0 %vm136_vm0, %v4644_v14  ;;  %4315 = vmatmul.mubr.msk.bf16.vlgmr.msra.gmra.mrb[28].mxu1 %vm136_vm0, %v4644_v14 }
  0x55   :  { %1022 = vmatpush1.bf16.xpose.msra.mxu0 %v4316_v6  ;;  %1062 = vmatpush1.bf16.xpose.msra.mxu1 %v4318_v8 }
  0x56   :  { %1101 = vmatprep.subr.bf16.mxu0 %v4321_v12  ;;  %1141 = vmatprep.subr.bf16.mxu1 %v4323_v13 }
  0xee   :  { %v4700_v15 = vpop.f32.mrb[0].mxu0  ;;  %v4702_v16 = vpop.f32.mrb[0].mxu1 }
  0xef   :  { %v4704_v17 = vpop.f32.mrb[1].mxu0  ;;  %v4706_v18 = vpop.f32.mrb[1].mxu1 }
  0xf0   :  { %v178_v19 = vpop.f32.mrb[2].mxu0  ;;  %v219_v20 = vpop.f32.mrb[2].mxu1 }
  0xf1   :  { %v179_v21 = vpop.f32.mrb[3].mxu0  ;;  %v220_v22 = vpop.f32.mrb[3].mxu1  ;;  %v523_v20 = vld [vmem:[#allocation2 + $0x2f0] sm:$0x77] }
  0xf6   :  { %v4708_v23 = vpop.f32.mrb[4].mxu0  ;;  %v4710_v24 = vpop.f32.mrb[4].mxu1 }
  0xf7   :  { %v4712_v25 = vpop.f32.mrb[5].mxu0  ;;  %v4714_v26 = vpop.f32.mrb[5].mxu1 }
  0xf8   :  { %v260_v27 = vpop.f32.mrb[6].mxu0  ;;  %v301_v28 = vpop.f32.mrb[6].mxu1 }
  0xf9   :  { %v261_v29 = vpop.f32.mrb[7].mxu0  ;;  %v302_v30 = vpop.f32.mrb[7].mxu1  ;;  %v524_v27 = vld [vmem:[#allocation2 + $0x2f8] sm:$0x77] }
  0xfe   :  { %v4716_v31 = vpop.f32.mrb[8].mxu0  ;;  %v4718_v32 = vpop.f32.mrb[8].mxu1 }
  0xff   :  { %v4720_v33 = vpop.f32.mrb[9].mxu0  ;;  %v4722_v34 = vpop.f32.mrb[9].mxu1 }
 0x100   :  { %v342_v35 = vpop.f32.mrb[10].mxu0  ;;  %v383_v36 = vpop.f32.mrb[10].mxu1 }
 0x101   :  { %v343_v37 = vpop.f32.mrb[11].mxu0  ;;  %v384_v38 = vpop.f32.mrb[11].mxu1  ;;  %v4324_v35 = vcombine.low %v521_v55, %v521_v55 }
 0x102   :  { %v4326_v38 = vcombine.low %v522_v59, %v522_v59 }
 0x106   :  { %v4724_v39 = vpop.f32.mrb[12].mxu0  ;;  %v4726_v40 = vpop.f32.mrb[12].mxu1 }
 0x107   :  { %v4728_v41 = vpop.f32.mrb[13].mxu0  ;;  %v4730_v42 = vpop.f32.mrb[13].mxu1 }
 0x108   :  { %v424_v43 = vpop.f32.mrb[14].mxu0  ;;  %v465_v44 = vpop.f32.mrb[14].mxu1 }
 0x109   :  { %v425_v45 = vpop.f32.mrb[15].mxu0  ;;  %v466_v46 = vpop.f32.mrb[15].mxu1  ;;  %v4329_v43 = vcombine.high %v523_v20, %v523_v20  ;;  %v4331_v44 = vcombine.high %v524_v27, %v524_v27 }
 0x10e   :  { %v639_v47 = vpop.f32.mrb[16].mxu0  ;;  %v680_v49 = vpop.f32.mrb[16].mxu1 }
 0x10f   :  { %v933_v48 = vmax.f32 %v639_v47, 0.0  ;;  %v641_v50 = vpop.f32.mrb[17].mxu0  ;;  %v935_v51 = vmax.f32 %v680_v49, 0.0  ;;  %v682_v53 = vpop.f32.mrb[17].mxu1 }
 0x110   :  { %v934_v52 = vmax.f32 %v641_v50, 0.0  ;;  %v643_v54 = vpop.f32.mrb[18].mxu0  ;;  %v936_v56 = vmax.f32 %v682_v53, 0.0  ;;  %v684_v57 = vpop.f32.mrb[18].mxu1  ;;  %v48_v53 = vld [vmem:[#allocation2 + $0x280] sm:$0x77] }
 0x111   :  { %v644_v58 = vpop.f32.mrb[19].mxu0  ;;  %v951_v60 = vpack.c.bf16 %v935_v51, %v935_v51  ;;  %v685_v62 = vpop.f32.mrb[19].mxu1  ;;  %v949_v1 = vpack.c.bf16 %v933_v48, %v933_v48  ;;  %v49_v57 = vld [vmem:[#allocation2 + $0x288] sm:$0x77] }
 0x112   :  { %v950_v61 = vpack.c.bf16 %v934_v52, %v934_v52  ;;  %v952_v2 = vpack.c.bf16 %v936_v56, %v936_v56 }
 0x114   :  { %1053 = vmatprep.mubr.bf16.mxu0 %v950_v61  ;;  %1093 = vmatprep.mubr.bf16.mxu1 %v952_v2  ;;  %v4328_v61 = vcombine.low %v523_v20, %v523_v20  ;;  %v4333_v2 = vcombine.high %v48_v53, %v48_v53 }
 0x115   :  { %1054 = vmatmul.mubr.bf16.vlgmr.msra.gmra.mrb[32].mxu0 %v949_v1  ;;  %1094 = vmatmul.mubr.bf16.vlgmr.msra.gmra.mrb[32].mxu1 %v951_v60  ;;  %v4330_v1 = vcombine.low %v524_v27, %v524_v27 }
 0x116   :  { %v721_v6 = vpop.f32.mrb[20].mxu0  ;;  %1102 = vmatpush1.bf16.xpose.msra.mxu0 %v4320_v63  ;;  %v762_v8 = vpop.f32.mrb[20].mxu1  ;;  %1142 = vmatpush1.bf16.xpose.msra.mxu1 %v4322_v3  ;;  %v4335_v3 = vcombine.high %v49_v57, %v49_v57 }
 0x117   :  { %v937_v7 = vmax.f32 %v721_v6, 0.0  ;;  %v723_v9 = vpop.f32.mrb[21].mxu0  ;;  %1181 = vmatprep.subr.bf16.mxu0 %v4325_v4  ;;  %v939_v12 = vmax.f32 %v762_v8, 0.0  ;;  %v764_v13 = vpop.f32.mrb[21].mxu1  ;;  %1221 = vmatprep.subr.bf16.mxu1 %v4327_v5 }
 0x118   :  { %v938_v10 = vmax.f32 %v723_v9, 0.0  ;;  %v725_v19 = vpop.f32.mrb[22].mxu0  ;;  %v940_v11 = vmax.f32 %v764_v13, 0.0  ;;  %v766_v21 = vpop.f32.mrb[22].mxu1  ;;  %v469_v13 = vmax.f32 %v4704_v17, 0.0 }
 0x119   :  { %v726_v22 = vpop.f32.mrb[23].mxu0  ;;  %v955_v28 = vpack.c.bf16 %v939_v12, %v939_v12  ;;  %v767_v30 = vpop.f32.mrb[23].mxu1  ;;  %v953_v36 = vpack.c.bf16 %v937_v7, %v937_v7  ;;  %v50_v21 = vld [vmem:[#allocation2 + $0x290] sm:$0x77] }
 0x11a   :  { %v954_v29 = vpack.c.bf16 %v938_v10, %v938_v10  ;;  %v956_v37 = vpack.c.bf16 %v940_v11, %v940_v11  ;;  %v471_v22 = vmax.f32 %v4706_v18, 0.0  ;;  %v4332_v30 = vcombine.low %v48_v53, %v48_v53 }
 0x11b   :  { %v470_v18 = vmax.f32 %v4702_v16, 0.0  ;;  %v472_v16 = vmax.f32 %v4708_v23, 0.0 }
 0x11c   :  { %1133 = vmatprep.mubr.bf16.mxu0 %v954_v29  ;;  %1173 = vmatprep.mubr.bf16.mxu1 %v956_v37 }
 0x11d   :  { %1134 = vmatmul.mubr.bf16.vlgmr.msra.gmra.mrb[36].mxu0 %v953_v36  ;;  %1174 = vmatmul.mubr.bf16.vlgmr.msra.gmra.mrb[36].mxu1 %v955_v28 }
 0x11e   :  { %v803_v45 = vpop.f32.mrb[24].mxu0  ;;  %1182 = vmatpush1.bf16.xpose.msra.mxu0 %v4324_v35  ;;  %v844_v47 = vpop.f32.mrb[24].mxu1  ;;  %1222 = vmatpush1.bf16.xpose.msra.mxu1 %v4326_v38  ;;  %v51_v35 = vld [vmem:[#allocation2 + $0x298] sm:$0x77]  ;;  %v4334_v38 = vcombine.low %v49_v57, %v49_v57 }
 0x11f   :  { %v941_v46 = vmax.f32 %v803_v45, 0.0  ;;  %v805_v48 = vpop.f32.mrb[25].mxu0  ;;  %1261 = vmatprep.subr.bf16.mxu0 %v4329_v43  ;;  %v943_v49 = vmax.f32 %v844_v47, 0.0  ;;  %v846_v51 = vpop.f32.mrb[25].mxu1  ;;  %1301 = vmatprep.subr.bf16.mxu1 %v4331_v44  ;;  %v4337_v43 = vcombine.high %v50_v21, %v50_v21  ;;  %v485_v44 = vpack.c.bf16 %v469_v13, %v469_v13 }
 0x120   :  { %v942_v50 = vmax.f32 %v805_v48, 0.0  ;;  %v807_v52 = vpop.f32.mrb[26].mxu0  ;;  %v944_v54 = vmax.f32 %v846_v51, 0.0  ;;  %v848_v55 = vpop.f32.mrb[26].mxu1  ;;  %v4339_v17 = vcombine.high %v51_v35, %v51_v35  ;;  %v487_v45 = vpack.c.bf16 %v471_v22, %v471_v22  ;;  %v52_v48 = vld [vmem:[#allocation2 + $0x2a0] sm:$0x77] }
 0x121   :  { %v808_v56 = vpop.f32.mrb[27].mxu0  ;;  %v959_v58 = vpack.c.bf16 %v943_v49, %v943_v49  ;;  %v849_v60 = vpop.f32.mrb[27].mxu1  ;;  %v957_v62 = vpack.c.bf16 %v941_v46, %v941_v46  ;;  %v468_v46 = vmax.f32 %v4700_v15, 0.0  ;;  %v473_v47 = vmax.f32 %v4712_v25, 0.0  ;;  %v53_v51 = vld [vmem:[#allocation2 + $0x2a8] sm:$0x77] }
 0x122   :  { %v958_v59 = vpack.c.bf16 %v942_v50, %v942_v50  ;;  %v960_v63 = vpack.c.bf16 %v944_v54, %v944_v54  ;;  %v475_v49 = vmax.f32 %v4714_v26, 0.0  ;;  %v4336_v50 = vcombine.low %v50_v21, %v50_v21  ;;  %v1728_v22 = vld [vmem:[#allocation2 + $0x1d0] sm:$0xff] }
 0x123   :  { %v484_v52 = vpack.c.bf16 %v468_v46, %v468_v46  ;;  %v4338_v53 = vcombine.low %v51_v35, %v51_v35  ;;  %v486_v54 = vpack.c.bf16 %v470_v18, %v470_v18  ;;  %v4341_v55 = vcombine.high %v52_v48, %v52_v48 }
 0x124   :  { %1213 = vmatprep.mubr.bf16.mxu0 %v958_v59  ;;  %1253 = vmatprep.mubr.bf16.mxu1 %v960_v63  ;;  %v489_v56 = vpack.c.bf16 %v473_v47, %v473_v47  ;;  %v4343_v15 = vcombine.high %v53_v51, %v53_v51  ;;  %v491_v57 = vpack.c.bf16 %v475_v49, %v475_v49  ;;  %v474_v25 = vmax.f32 %v4710_v24, 0.0  ;;  %v1724_v47 = vld [vmem:[#allocation2 + $0xb0] sm:$0xff] }
 0x125   :  { %1214 = vmatmul.mubr.bf16.vlgmr.msra.gmra.mrb[40].mxu0 %v957_v62  ;;  %1254 = vmatmul.mubr.bf16.vlgmr.msra.gmra.mrb[40].mxu1 %v959_v58  ;;  %v477_v26 = vmax.f32 %v4720_v33, 0.0  ;;  %v54_v58 = vld [vmem:[#allocation2 + $0x2b0] sm:$0x77]  ;;  %v479_v59 = vmax.f32 %v4722_v34, 0.0  ;;  %v4340_v60 = vcombine.low %v52_v48, %v52_v48  ;;  %v488_v62 = vpack.c.bf16 %v472_v16, %v472_v16 }
 0x126   :  { %v885_v4 = vpop.f32.mrb[28].mxu0  ;;  %1262 = vmatpush1.bf16.xpose.msra.mxu0 %v4328_v61  ;;  %v926_v6 = vpop.f32.mrb[28].mxu1  ;;  %1302 = vmatpush1.bf16.xpose.msra.mxu1 %v4330_v1  ;;  %v55_v61 = vld [vmem:[#allocation2 + $0x2b8] sm:$0x77]  ;;  %v4342_v63 = vcombine.low %v53_v51, %v53_v51  ;;  %v490_v1 = vpack.c.bf16 %v474_v25, %v474_v25  ;;  %v476_v24 = vmax.f32 %v4716_v31, 0.0  ;;  %v478_v33 = vmax.f32 %v4718_v32, 0.0 }
 0x127   :  { %v945_v5 = vmax.f32 %v885_v4, 0.0  ;;  %v887_v7 = vpop.f32.mrb[29].mxu0  ;;  %1397 = vmatprep.subr.bf16.mxu0 %v4333_v2  ;;  %v947_v8 = vmax.f32 %v926_v6, 0.0  ;;  %v928_v12 = vpop.f32.mrb[29].mxu1  ;;  %1437 = vmatprep.subr.bf16.mxu1 %v4335_v3  ;;  %v4345_v2 = vcombine.high %v54_v58, %v54_v58  ;;  %v493_v3 = vpack.c.bf16 %v477_v26, %v477_v26  ;;  %v1726_v6 = vld [vmem:[#allocation2 + $0x1c0] sm:$0xff]  ;;  %v1732_v48 = vld [vmem:[#allocation2 + $0x1f0] sm:$0xff] }
 0x128   :  { %v946_v9 = vmax.f32 %v887_v7, 0.0  ;;  %v889_v10 = vpop.f32.mrb[30].mxu0  ;;  %v948_v19 = vmax.f32 %v928_v12, 0.0  ;;  %v930_v20 = vpop.f32.mrb[30].mxu1  ;;  %v4347_v23 = vcombine.high %v55_v61, %v55_v61  ;;  %v495_v4 = vpack.c.bf16 %v479_v59, %v479_v59  ;;  %v1727_v12 = vld [vmem:[#allocation2 + $0x1c8] sm:$0xff]  ;;  %v1733_v51 = vld [vmem:[#allocation2 + $0x1f8] sm:$0xff] }
 0x129   :  { %v890_v11 = vpop.f32.mrb[31].mxu0  ;;  %v963_v27 = vpack.c.bf16 %v947_v8, %v947_v8  ;;  %v931_v29 = vpop.f32.mrb[31].mxu1  ;;  %v961_v36 = vpack.c.bf16 %v945_v5, %v945_v5  ;;  %v481_v34 = vmax.f32 %v4728_v41, 0.0  ;;  %v1718_v5 = vld [vmem:[#allocation2 + $0x80] sm:$0xff]  ;;  %v483_v7 = vmax.f32 %v4730_v42, 0.0  ;;  %v1720_v42 = vld [vmem:[#allocation2 + $0x90] sm:$0xff] }
 0x12a   :  { %v962_v28 = vpack.c.bf16 %v946_v9, %v946_v9  ;;  %v964_v37 = vpack.c.bf16 %v948_v19, %v948_v19  ;;  %v4344_v8 = vcombine.low %v54_v58, %v54_v58  ;;  %v1719_v9 = vld [vmem:[#allocation2 + $0x88] sm:$0xff]  ;;  %v492_v10 = vpack.c.bf16 %v476_v24, %v476_v24  ;;  %v1729_v29 = vld [vmem:[#allocation2 + $0x1d8] sm:$0xff]  ;;  %v4776_v59 = vld [vmem:[#allocation2 + $0x310] sm:$0x77] }
 0x12b   :  { %v4346_v13 = vcombine.low %v55_v61, %v55_v61  ;;  %v494_v19 = vpack.c.bf16 %v478_v33, %v478_v33  ;;  %v4349_v31 = vcombine.high %v1718_v5, %v1726_v6  ;;  %v497_v20 = vpack.c.bf16 %v481_v34, %v481_v34 }
 0x12c   :  { %1293 = vmatprep.mubr.bf16.mxu0 %v962_v28  ;;  %1333 = vmatprep.mubr.bf16.mxu1 %v964_v37  ;;  %v4351_v11 = vcombine.high %v1719_v9, %v1727_v12  ;;  %v499_v32 = vpack.c.bf16 %v483_v7, %v483_v7  ;;  %v480_v41 = vmax.f32 %v4724_v39, 0.0  ;;  %v482_v21 = vmax.f32 %v4726_v40, 0.0  ;;  %v1721_v28 = vld [vmem:[#allocation2 + $0x98] sm:$0xff]  ;;  %v1722_v39 = vld [vmem:[#allocation2 + $0xa0] sm:$0xff] }
 0x12d   :  { %1294 = vmatmul.mubr.bf16.vlgmr.msra.gmra.mrb[44].mxu0 %v961_v36  ;;  %1334 = vmatmul.mubr.bf16.vlgmr.msra.gmra.mrb[44].mxu1 %v963_v27  ;;  %v4348_v27 = vcombine.low %v1718_v5, %v1726_v6  ;;  %v4350_v35 = vcombine.low %v1719_v9, %v1727_v12  ;;  %v4353_v37 = vcombine.high %v1720_v42, %v1728_v22  ;;  %v1730_v40 = vld [vmem:[#allocation2 + $0x1e0] sm:$0xff] }
 0x12e   :  { %1398 = vmatpush1.bf16.xpose.msra.mxu0 %v4332_v30  ;;  %1429 = vmatprep.mubr.bf16.mxu0 %v485_v44  ;;  %v496_v30 = vpack.c.bf16 %v480_v41, %v480_v41  ;;  %v498_v36 = vpack.c.bf16 %v482_v21, %v482_v21  ;;  %v1723_v44 = vld [vmem:[#allocation2 + $0xa8] sm:$0xff]  ;;  %v4357_v46 = vcombine.high %v1722_v39, %v1730_v40 }
 0x12f   :  { %1438 = vmatpush1.bf16.xpose.msra.mxu1 %v4334_v38  ;;  %1469 = vmatprep.mubr.bf16.mxu1 %v487_v45  ;;  %v4355_v38 = vcombine.high %v1721_v28, %v1729_v29  ;;  %v4354_v45 = vcombine.low %v1721_v28, %v1729_v29  ;;  %v4356_v49 = vcombine.low %v1722_v39, %v1730_v40 }
 0x130   :  { %1477 = vmatprep.subr.bf16.mxu0 %v4337_v43  ;;  %1517 = vmatprep.subr.bf16.mxu1 %v4339_v17  ;;  %v4352_v43 = vcombine.low %v1720_v42, %v1728_v22  ;;  %v1731_v17 = vld [vmem:[#allocation2 + $0x1e8] sm:$0xff]  ;;  %v4377_v61 = vcombine.high %v4776_v59, %v4776_v59 }
 0x131   :  { %v4359_v18 = vcombine.high %v1723_v44, %v1731_v17 }
 0x135   :  { %1430 = vmatmul.mubr.bf16.vlgmr.msra.gmra.mrb[48].mxu0 %v484_v52  ;;  %v4358_v52 = vcombine.low %v1723_v44, %v1731_v17 }
 0x136   :  { %1470 = vmatmul.mubr.bf16.vlgmr.msra.gmra.mrb[48].mxu1 %v486_v54  ;;  %1478 = vmatpush1.bf16.xpose.msra.mxu0 %v4336_v50  ;;  %v1725_v50 = vld [vmem:[#allocation2 + $0xb8] sm:$0xff] }
 0x137   :  { %1509 = vmatprep.mubr.bf16.mxu0 %v489_v56  ;;  %1518 = vmatpush1.bf16.xpose.msra.mxu1 %v4338_v53  ;;  %v4361_v53 = vcombine.high %v1724_v47, %v1732_v48  ;;  %v4363_v54 = vcombine.high %v1725_v50, %v1733_v51  ;;  %v4362_v56 = vcombine.low %v1725_v50, %v1733_v51 }
 0x138   :  { %1549 = vmatprep.mubr.bf16.mxu1 %v491_v57  ;;  %1557 = vmatprep.subr.bf16.mxu0 %v4341_v55  ;;  %v4360_v55 = vcombine.low %v1724_v47, %v1732_v48  ;;  %v1735_v57 = vld [vmem:[#allocation2 + $0x308] sm:$0x77] }
 0x139   :  { %1597 = vmatprep.subr.bf16.mxu1 %v4343_v15  ;;  %v1734_v15 = vld [vmem:[#allocation2 + $0x300] sm:$0x77]  ;;  %v4374_v26 = vcombine.low %v1735_v57, %v1735_v57  ;;  %v4375_v58 = vcombine.high %v1735_v57, %v1735_v57 }
 0x13a   :  { %v4372_v16 = vcombine.low %v1734_v15, %v1734_v15  ;;  %v4373_v25 = vcombine.high %v1734_v15, %v1734_v15 }
 0x13d   :  { %1510 = vmatmul.mubr.bf16.vlgmr.msra.gmra.mrb[52].mxu0 %v488_v62 }
 0x13e   :  { %1550 = vmatmul.mubr.bf16.vlgmr.msra.gmra.mrb[52].mxu1 %v490_v1  ;;  %1558 = vmatpush1.bf16.xpose.msra.mxu0 %v4340_v60  ;;  %v4778_v60 = vld [vmem:[#allocation2 + $0x318] sm:$0x77] }
 0x13f   :  { %1589 = vmatprep.mubr.bf16.mxu0 %v493_v3  ;;  %1598 = vmatpush1.bf16.xpose.msra.mxu1 %v4342_v63  ;;  %v4379_v62 = vcombine.high %v4778_v60, %v4778_v60 }
 0x140   :  { %1629 = vmatprep.mubr.bf16.mxu1 %v495_v4  ;;  %1637 = vmatprep.subr.bf16.mxu0 %v4345_v2 }
 0x141   :  { %1677 = vmatprep.subr.bf16.mxu1 %v4347_v23 }
 0x145   :  { %1590 = vmatmul.mubr.bf16.vlgmr.msra.gmra.mrb[56].mxu0 %v492_v10 }
 0x146   :  { %1630 = vmatmul.mubr.bf16.vlgmr.msra.gmra.mrb[56].mxu1 %v494_v19  ;;  %1638 = vmatpush1.bf16.xpose.msra.mxu0 %v4344_v8 }
 0x147   :  { %1669 = vmatprep.mubr.bf16.mxu0 %v497_v20  ;;  %1678 = vmatpush1.bf16.xpose.msra.mxu1 %v4346_v13 }
 0x148   :  { %1709 = vmatprep.mubr.bf16.mxu1 %v499_v32  ;;  %1822 = vmatprep.subr.bf16.mxu0 %v4349_v31 }
 0x149   :  { %1863 = vmatprep.subr.bf16.mxu1 %v4351_v11 }
 0x14d   :  { %1670 = vmatmul.mubr.bf16.vlgmr.msra.gmra.mrb[60].mxu0 %v496_v30 }
 0x14e   :  { %1710 = vmatmul.mubr.bf16.vlgmr.msra.gmra.mrb[60].mxu1 %v498_v36  ;;  %1823 = vmatpush1.bf16.msra.mxu0 %v4348_v27 }
 0x14f   :  { %1864 = vmatpush1.bf16.msra.mxu1 %v4350_v35  ;;  %1854 = vmatprep.mubr.bf16.mxu0 %v4605_v0 }
 0x150   :  { %1895 = vmatprep.mubr.bf16.mxu1 %v4605_v0  ;;  %1904 = vmatprep.subr.bf16.mxu0 %v4353_v37 }
 0x151   :  { %1945 = vmatprep.subr.bf16.mxu1 %v4355_v38 }
 0x155   :  { %4364 = vmatmul.mubr.msk.bf16.vlgmr.msra.gmra.mrb[64].mxu0 %vm136_vm0, %v4644_v14 }
 0x156   :  { %4365 = vmatmul.mubr.msk.bf16.vlgmr.msra.gmra.mrb[64].mxu1 %vm136_vm0, %v4644_v14  ;;  %1905 = vmatpush1.bf16.msra.mxu0 %v4352_v43 }
 0x157   :  { %1946 = vmatpush1.bf16.msra.mxu1 %v4354_v45  ;;  %1936 = vmatprep.mubr.bf16.mxu0 %v4605_v0 }
 0x158   :  { %1977 = vmatprep.mubr.bf16.mxu1 %v4605_v0  ;;  %1986 = vmatprep.subr.bf16.mxu0 %v4357_v46 }
 0x159   :  { %2027 = vmatprep.subr.bf16.mxu1 %v4359_v18 }
 0x15d   :  { %4366 = vmatmul.mubr.msk.bf16.vlgmr.msra.gmra.mrb[68].mxu0 %vm136_vm0, %v4644_v14 }
 0x15e   :  { %4367 = vmatmul.mubr.msk.bf16.vlgmr.msra.gmra.mrb[68].mxu1 %vm136_vm0, %v4644_v14  ;;  %1987 = vmatpush1.bf16.msra.mxu0 %v4356_v49 }
 0x15f   :  { %2028 = vmatpush1.bf16.msra.mxu1 %v4358_v52  ;;  %2018 = vmatprep.mubr.bf16.mxu0 %v4605_v0 }
 0x160   :  { %2059 = vmatprep.mubr.bf16.mxu1 %v4605_v0  ;;  %2068 = vmatprep.subr.bf16.mxu0 %v4361_v53 }
 0x161   :  { %2109 = vmatprep.subr.bf16.mxu1 %v4363_v54 }
 0x165   :  { %4368 = vmatmul.mubr.msk.bf16.vlgmr.msra.gmra.mrb[72].mxu0 %vm136_vm0, %v4644_v14 }
 0x166   :  { %4369 = vmatmul.mubr.msk.bf16.vlgmr.msra.gmra.mrb[72].mxu1 %vm136_vm0, %v4644_v14  ;;  %2069 = vmatpush1.bf16.msra.mxu0 %v4360_v55 }
 0x167   :  { %2110 = vmatpush1.bf16.msra.mxu1 %v4362_v56  ;;  %2100 = vmatprep.mubr.bf16.mxu0 %v4605_v0 }
 0x168   :  { %2141 = vmatprep.mubr.bf16.mxu1 %v4605_v0  ;;  %2238 = vmatprep.subr.bf16.mxu0 %v4373_v25 }
 0x169   :  { %2278 = vmatprep.subr.bf16.mxu1 %v4375_v58 }
 0x16d   :  { %4370 = vmatmul.mubr.msk.bf16.vlgmr.msra.gmra.mrb[76].mxu0 %vm136_vm0, %v4644_v14 }
 0x16e   :  { %4371 = vmatmul.mubr.msk.bf16.vlgmr.msra.gmra.mrb[76].mxu1 %vm136_vm0, %v4644_v14 }
 0x16f   :  { %2239 = vmatpush1.bf16.xpose.msra.mxu0 %v4372_v16 }
 0x170   :  { %2279 = vmatpush1.bf16.xpose.msra.mxu1 %v4374_v26  ;;  %2318 = vmatprep.subr.bf16.mxu0 %v4377_v61 }
 0x171   :  { %2358 = vmatprep.subr.bf16.mxu1 %v4379_v62 }
 0x1e8   :  { %v1055_v63 = vpop.f32.mrb[32].mxu0  ;;  %v1095_v1 = vpop.f32.mrb[32].mxu1 }
 0x1e9   :  { %v1057_v2 = vpop.f32.mrb[33].mxu0  ;;  %v1096_v3 = vadd.f32 %v1095_v1, %v1055_v63  ;;  %v1097_v23 = vpop.f32.mrb[33].mxu1 }
 0x1ea   :  { %v1058_v4 = vpop.f32.mrb[34].mxu0  ;;  %v1098_v24 = vpop.f32.mrb[34].mxu1 }
 0x1eb   :  { %v1059_v33 = vpop.f32.mrb[35].mxu0  ;;  %v1099_v34 = vpop.f32.mrb[35].mxu1 }
 0x1f0   :  { %v1135_v5 = vpop.f32.mrb[36].mxu0  ;;  %v1175_v7 = vpop.f32.mrb[36].mxu1 }
 0x1f1   :  { %v1136_v6 = vadd.f32 %v1135_v5, %v1096_v3  ;;  %v1137_v8 = vpop.f32.mrb[37].mxu0  ;;  %v1177_v9 = vpop.f32.mrb[37].mxu1 }
 0x1f2   :  { %v1138_v12 = vpop.f32.mrb[38].mxu0  ;;  %v1178_v13 = vpop.f32.mrb[38].mxu1 }
 0x1f3   :  { %v1176_v10 = vadd.f32 %v1175_v7, %v1136_v6  ;;  %v1139_v19 = vpop.f32.mrb[39].mxu0  ;;  %v1179_v31 = vpop.f32.mrb[39].mxu1 }
 0x1f8   :  { %v1215_v20 = vpop.f32.mrb[40].mxu0  ;;  %v1255_v32 = vpop.f32.mrb[40].mxu1 }
 0x1f9   :  { %v1216_v11 = vadd.f32 %v1215_v20, %v1176_v10  ;;  %v1217_v41 = vpop.f32.mrb[41].mxu0  ;;  %v1257_v21 = vpop.f32.mrb[41].mxu1 }
 0x1fa   :  { %v1218_v42 = vpop.f32.mrb[42].mxu0  ;;  %v1258_v27 = vpop.f32.mrb[42].mxu1 }
 0x1fb   :  { %v1256_v22 = vadd.f32 %v1255_v32, %v1216_v11  ;;  %v1219_v28 = vpop.f32.mrb[43].mxu0  ;;  %v1259_v29 = vpop.f32.mrb[43].mxu1 }
 0x1fc   :  { %v1738_v28 = vld [vmem:[#allocation2 + $0x320] sm:$0x77] }
 0x200   :  { %v1295_v30 = vpop.f32.mrb[44].mxu0  ;;  %v1335_v36 = vpop.f32.mrb[44].mxu1 }
 0x201   :  { %v1296_v35 = vadd.f32 %v1295_v30, %v1256_v22  ;;  %v1297_v37 = vpop.f32.mrb[45].mxu0  ;;  %v1337_v38 = vpop.f32.mrb[45].mxu1 }
 0x202   :  { %v1298_v39 = vpop.f32.mrb[46].mxu0  ;;  %v1338_v43 = vpop.f32.mrb[46].mxu1 }
 0x203   :  { %v1336_v40 = vadd.f32 %v1335_v36, %v1296_v35  ;;  %v1299_v44 = vpop.f32.mrb[47].mxu0  ;;  %v1339_v17 = vpop.f32.mrb[47].mxu1  ;;  %v1739_v36 = vld [vmem:[#allocation2 + $0x328] sm:$0x77] }
 0x204   :  { %v4378_v17 = vcombine.low %v4778_v60, %v4778_v60 }
 0x208   :  { %v1431_v45 = vpop.f32.mrb[48].mxu0 }
 0x209   :  { %v1432_v46 = vadd.f32 %v1431_v45, %v1336_v40  ;;  %v1471_v18 = vpop.f32.mrb[48].mxu1  ;;  %v1433_v47 = vpop.f32.mrb[49].mxu0  ;;  %v4376_v40 = vcombine.low %v4776_v59, %v4776_v59  ;;  %v4381_v45 = vcombine.high %v1738_v28, %v1738_v28 }
 0x20a   :  { %v1473_v48 = vpop.f32.mrb[49].mxu1  ;;  %v1434_v49 = vpop.f32.mrb[50].mxu0 }
 0x20b   :  { %v1472_v50 = vadd.f32 %v1471_v18, %v1432_v46  ;;  %v1474_v51 = vpop.f32.mrb[50].mxu1  ;;  %v1435_v52 = vpop.f32.mrb[51].mxu0  ;;  %v4383_v46 = vcombine.high %v1739_v36, %v1739_v36 }
 0x20c   :  { %v1475_v53 = vpop.f32.mrb[51].mxu1 }
 0x20d   :  { %v1740_v53 = vld [vmem:[#allocation2 + $0x330] sm:$0x77] }
 0x210   :  { %v1511_v54 = vpop.f32.mrb[52].mxu0 }
 0x211   :  { %v1512_v55 = vadd.f32 %v1511_v54, %v1472_v50  ;;  %v1551_v56 = vpop.f32.mrb[52].mxu1  ;;  %v1513_v15 = vpop.f32.mrb[53].mxu0 }
 0x212   :  { %v1553_v57 = vpop.f32.mrb[53].mxu1  ;;  %v1514_v16 = vpop.f32.mrb[54].mxu0 }
 0x213   :  { %v1552_v25 = vadd.f32 %v1551_v56, %v1512_v55  ;;  %v1554_v26 = vpop.f32.mrb[54].mxu1  ;;  %v1515_v58 = vpop.f32.mrb[55].mxu0  ;;  %v1741_v56 = vld [vmem:[#allocation2 + $0x338] sm:$0x77] }
 0x214   :  { %v1555_v61 = vpop.f32.mrb[55].mxu1 }
 0x215   :  { %v4382_v61 = vcombine.low %v1739_v36, %v1739_v36 }
 0x218   :  { %v1591_v62 = vpop.f32.mrb[56].mxu0 }
 0x219   :  { %v1592_v63 = vadd.f32 %v1591_v62, %v1552_v25  ;;  %v1631_v1 = vpop.f32.mrb[56].mxu1  ;;  %v1593_v2 = vpop.f32.mrb[57].mxu0  ;;  %v4380_v25 = vcombine.low %v1738_v28, %v1738_v28  ;;  %v4385_v62 = vcombine.high %v1740_v53, %v1740_v53 }
 0x21a   :  { %v1633_v3 = vpop.f32.mrb[57].mxu1  ;;  %v1594_v23 = vpop.f32.mrb[58].mxu0 }
 0x21b   :  { %v1632_v4 = vadd.f32 %v1631_v1, %v1592_v63  ;;  %v1634_v24 = vpop.f32.mrb[58].mxu1  ;;  %v1595_v33 = vpop.f32.mrb[59].mxu0  ;;  %v4387_v63 = vcombine.high %v1741_v56, %v1741_v56 }
 0x21c   :  { %v1635_v34 = vpop.f32.mrb[59].mxu1 }
 0x220   :  { %v1671_v5 = vpop.f32.mrb[60].mxu0 }
 0x221   :  { %v1672_v6 = vadd.f32 %v1671_v5, %v1632_v4  ;;  %v1711_v7 = vpop.f32.mrb[60].mxu1  ;;  %v1673_v8 = vpop.f32.mrb[61].mxu0  ;;  %v2560_v5 = vld [vmem:[#allocation2 + $0xc0] sm:$0xff] }
 0x222   :  { %v1713_v9 = vpop.f32.mrb[61].mxu1  ;;  %v1674_v12 = vpop.f32.mrb[62].mxu0 }
 0x223   :  { %v4784_v10 = vadd.f32 %v1711_v7, %v1672_v6  ;;  %v1714_v13 = vpop.f32.mrb[62].mxu1  ;;  %v1675_v19 = vpop.f32.mrb[63].mxu0  ;;  %v2568_v6 = vld [vmem:[#allocation2 + $0x200] sm:$0xff]  ;;  %v2561_v12 = vld [vmem:[#allocation2 + $0xc8] sm:$0xff] }
 0x224   :  { %v1715_v31 = vpop.f32.mrb[63].mxu1  ;;  %v2569_v13 = vld [vmem:[#allocation2 + $0x208] sm:$0xff] }
 0x228   :  { %v1856_v20 = vpop.f32.mrb[64].mxu0 }
 0x229   :  { %v2150_v11 = vmax.f32 %v1856_v20, 0.0  ;;  %v1897_v32 = vpop.f32.mrb[64].mxu1  ;;  %v1858_v41 = vpop.f32.mrb[65].mxu0 }
 0x22a   :  { %v2152_v21 = vmax.f32 %v1897_v32, 0.0  ;;  %v2151_v42 = vmax.f32 %v1858_v41, 0.0  ;;  %v1899_v22 = vpop.f32.mrb[65].mxu1  ;;  %v1860_v27 = vpop.f32.mrb[66].mxu0 }
 0x22b   :  { %v2153_v29 = vmax.f32 %v1899_v22, 0.0  ;;  %v1901_v30 = vpop.f32.mrb[66].mxu1  ;;  %v1861_v35 = vpop.f32.mrb[67].mxu0  ;;  %v2166_v43 = vpack.c.bf16 %v2150_v11, %v2150_v11  ;;  %v4384_v11 = vcombine.low %v1740_v53, %v1740_v53  ;;  %v4391_v22 = vcombine.high %v2561_v12, %v2569_v13 }
 0x22c   :  { %v2168_v37 = vpack.c.bf16 %v2152_v21, %v2152_v21  ;;  %v2167_v38 = vpack.c.bf16 %v2151_v42, %v2151_v42  ;;  %v1902_v39 = vpop.f32.mrb[67].mxu1  ;;  %v4386_v21 = vcombine.low %v1741_v56, %v1741_v56  ;;  %v4389_v42 = vcombine.high %v2560_v5, %v2568_v6  ;;  %v2565_v56 = vld [vmem:[#allocation2 + $0xe8] sm:$0xff] }
 0x22d   :  { %v2169_v44 = vpack.c.bf16 %v2153_v29, %v2153_v29 }
 0x22e   :  { %2270 = vmatprep.mubr.bf16.mxu0 %v2167_v38 }
 0x22f   :  { %2310 = vmatprep.mubr.bf16.mxu1 %v2169_v44  ;;  %2271 = vmatmul.mubr.bf16.vlgmr.msra.gmra.mrb[80].mxu0 %v2166_v43  ;;  %v2562_v44 = vld [vmem:[#allocation2 + $0xd0] sm:$0xff] }
 0x230   :  { %2311 = vmatmul.mubr.bf16.vlgmr.msra.gmra.mrb[80].mxu1 %v2168_v37  ;;  %v1938_v18 = vpop.f32.mrb[68].mxu0  ;;  %2319 = vmatpush1.bf16.xpose.msra.mxu0 %v4376_v40 }
 0x231   :  { %v2154_v47 = vmax.f32 %v1938_v18, 0.0  ;;  %v1979_v48 = vpop.f32.mrb[68].mxu1  ;;  %2359 = vmatpush1.bf16.xpose.msra.mxu1 %v4378_v17  ;;  %v1940_v49 = vpop.f32.mrb[69].mxu0  ;;  %2398 = vmatprep.subr.bf16.mxu0 %v4381_v45  ;;  %v2570_v17 = vld [vmem:[#allocation2 + $0x210] sm:$0xff] }
 0x232   :  { %v2156_v50 = vmax.f32 %v1979_v48, 0.0  ;;  %v2155_v59 = vmax.f32 %v1940_v49, 0.0  ;;  %v1981_v51 = vpop.f32.mrb[69].mxu1  ;;  %v1942_v52 = vpop.f32.mrb[70].mxu0  ;;  %2438 = vmatprep.subr.bf16.mxu1 %v4383_v46  ;;  %v2563_v48 = vld [vmem:[#allocation2 + $0xd8] sm:$0xff] }
 0x233   :  { %v2157_v60 = vmax.f32 %v1981_v51, 0.0  ;;  %v1983_v54 = vpop.f32.mrb[70].mxu1  ;;  %v1943_v55 = vpop.f32.mrb[71].mxu0  ;;  %v2170_v26 = vpack.c.bf16 %v2154_v47, %v2154_v47  ;;  %v4388_v47 = vcombine.low %v2560_v5, %v2568_v6  ;;  %v2571_v49 = vld [vmem:[#allocation2 + $0x218] sm:$0xff]  ;;  %v4390_v51 = vcombine.low %v2561_v12, %v2569_v13 }
 0x234   :  { %v2172_v15 = vpack.c.bf16 %v2156_v50, %v2156_v50  ;;  %v2171_v57 = vpack.c.bf16 %v2155_v59, %v2155_v59  ;;  %v1984_v16 = vpop.f32.mrb[71].mxu1  ;;  %v4393_v52 = vcombine.high %v2562_v44, %v2570_v17  ;;  %v4395_v53 = vcombine.high %v2563_v48, %v2571_v49  ;;  %v2572_v54 = vld [vmem:[#allocation2 + $0x220] sm:$0xff] }
 0x235   :  { %v2173_v58 = vpack.c.bf16 %v2157_v60, %v2157_v60  ;;  %v2564_v60 = vld [vmem:[#allocation2 + $0xe0] sm:$0xff]  ;;  %v4392_v55 = vcombine.low %v2562_v44, %v2570_v17 }
 0x236   :  { %2350 = vmatprep.mubr.bf16.mxu0 %v2171_v57  ;;  %v4394_v57 = vcombine.low %v2563_v48, %v2571_v49  ;;  %v4397_v16 = vcombine.high %v2564_v60, %v2572_v54 }
 0x237   :  { %2390 = vmatprep.mubr.bf16.mxu1 %v2173_v58  ;;  %2351 = vmatmul.mubr.bf16.vlgmr.msra.gmra.mrb[84].mxu0 %v2170_v26  ;;  %v2566_v26 = vld [vmem:[#allocation2 + $0xf0] sm:$0xff] }
 0x238   :  { %2391 = vmatmul.mubr.bf16.vlgmr.msra.gmra.mrb[84].mxu1 %v2172_v15  ;;  %v2020_v1 = vpop.f32.mrb[72].mxu0  ;;  %2399 = vmatpush1.bf16.xpose.msra.mxu0 %v4380_v25  ;;  %v2573_v15 = vld [vmem:[#allocation2 + $0x228] sm:$0xff]  ;;  %v2574_v58 = vld [vmem:[#allocation2 + $0x230] sm:$0xff] }
 0x239   :  { %v2158_v2 = vmax.f32 %v2020_v1, 0.0  ;;  %v2061_v3 = vpop.f32.mrb[72].mxu1  ;;  %2439 = vmatpush1.bf16.xpose.msra.mxu1 %v4382_v61  ;;  %v2022_v23 = vpop.f32.mrb[73].mxu0  ;;  %2478 = vmatprep.subr.bf16.mxu0 %v4385_v62  ;;  %v4399_v25 = vcombine.high %v2565_v56, %v2573_v15  ;;  %v4396_v61 = vcombine.low %v2564_v60, %v2572_v54  ;;  %v2567_v62 = vld [vmem:[#allocation2 + $0xf8] sm:$0xff]  ;;  %v4398_v1 = vcombine.low %v2565_v56, %v2573_v15 }
 0x23a   :  { %v2160_v4 = vmax.f32 %v2061_v3, 0.0  ;;  %v2159_v24 = vmax.f32 %v2022_v23, 0.0  ;;  %v2063_v33 = vpop.f32.mrb[73].mxu1  ;;  %v2024_v34 = vpop.f32.mrb[74].mxu0  ;;  %2518 = vmatprep.subr.bf16.mxu1 %v4387_v63  ;;  %v2575_v63 = vld [vmem:[#allocation2 + $0x238] sm:$0xff]  ;;  %v4400_v23 = vcombine.low %v2566_v26, %v2574_v58 }
 0x23b   :  { %v2161_v7 = vmax.f32 %v2063_v33, 0.0  ;;  %v2065_v8 = vpop.f32.mrb[74].mxu1  ;;  %v2025_v9 = vpop.f32.mrb[75].mxu0  ;;  %v2174_v32 = vpack.c.bf16 %v2158_v2, %v2158_v2  ;;  %v4401_v2 = vcombine.high %v2566_v26, %v2574_v58  ;;  %v4403_v3 = vcombine.high %v2567_v62, %v2575_v63  ;;  %v2577_v33 = vld [vmem:[#allocation2 + $0x348] sm:$0x77] }
 0x23c   :  { %v2176_v19 = vpack.c.bf16 %v2160_v4, %v2160_v4  ;;  %v2175_v31 = vpack.c.bf16 %v2159_v24, %v2159_v24  ;;  %v2066_v20 = vpop.f32.mrb[75].mxu1  ;;  %v4402_v4 = vcombine.low %v2567_v62, %v2575_v63  ;;  %v2576_v24 = vld [vmem:[#allocation2 + $0x340] sm:$0x77]  ;;  %v4414_v6 = vcombine.low %v2577_v33, %v2577_v33  ;;  %v4814_v8 = vld [vmem:[#allocation2 + $0x350] sm:$0x77] }
 0x23d   :  { %v2177_v41 = vpack.c.bf16 %v2161_v7, %v2161_v7  ;;  %v4412_v34 = vcombine.low %v2576_v24, %v2576_v24  ;;  %v4413_v5 = vcombine.high %v2576_v24, %v2576_v24  ;;  %v4415_v7 = vcombine.high %v2577_v33, %v2577_v33  ;;  %v4816_v9 = vld [vmem:[#allocation2 + $0x358] sm:$0x77]  ;;  %v2581_v33 = vld [vmem:[#allocation2 + $0x368] sm:$0x77] }
 0x23e   :  { %2430 = vmatprep.mubr.bf16.mxu0 %v2175_v31  ;;  %v4417_v12 = vcombine.high %v4814_v8, %v4814_v8  ;;  %v4419_v13 = vcombine.high %v4816_v9, %v4816_v9 }
 0x23f   :  { %2470 = vmatprep.mubr.bf16.mxu1 %v2177_v41  ;;  %2431 = vmatmul.mubr.bf16.vlgmr.msra.gmra.mrb[88].mxu0 %v2174_v32 }
 0x240   :  { %2471 = vmatmul.mubr.bf16.vlgmr.msra.gmra.mrb[88].mxu1 %v2176_v19  ;;  %v2102_v27 = vpop.f32.mrb[76].mxu0  ;;  %2479 = vmatpush1.bf16.xpose.msra.mxu0 %v4384_v11 }
 0x241   :  { %v2162_v28 = vmax.f32 %v2102_v27, 0.0  ;;  %v2143_v29 = vpop.f32.mrb[76].mxu1  ;;  %2519 = vmatpush1.bf16.xpose.msra.mxu1 %v4386_v21  ;;  %v2104_v30 = vpop.f32.mrb[77].mxu0  ;;  %2664 = vmatprep.subr.bf16.mxu0 %v4389_v42 }
 0x242   :  { %v2164_v35 = vmax.f32 %v2143_v29, 0.0  ;;  %v2163_v36 = vmax.f32 %v2104_v30, 0.0  ;;  %v2145_v37 = vpop.f32.mrb[77].mxu1  ;;  %v2106_v38 = vpop.f32.mrb[78].mxu0  ;;  %2705 = vmatprep.subr.bf16.mxu1 %v4391_v22 }
 0x243   :  { %v2165_v39 = vmax.f32 %v2145_v37, 0.0  ;;  %v2147_v40 = vpop.f32.mrb[78].mxu1  ;;  %v2107_v43 = vpop.f32.mrb[79].mxu0  ;;  %v2178_v50 = vpack.c.bf16 %v2162_v28, %v2162_v28 }
 0x244   :  { %v2180_v45 = vpack.c.bf16 %v2164_v35, %v2164_v35  ;;  %v2179_v46 = vpack.c.bf16 %v2163_v36, %v2163_v36  ;;  %v2148_v18 = vpop.f32.mrb[79].mxu1 }
 0x245   :  { %v2181_v59 = vpack.c.bf16 %v2165_v39, %v2165_v39 }
 0x246   :  { %2510 = vmatprep.mubr.bf16.mxu0 %v2179_v46 }
 0x247   :  { %2550 = vmatprep.mubr.bf16.mxu1 %v2181_v59  ;;  %2511 = vmatmul.mubr.bf16.vlgmr.msra.gmra.mrb[92].mxu0 %v2178_v50 }
 0x248   :  { %2551 = vmatmul.mubr.bf16.vlgmr.msra.gmra.mrb[92].mxu1 %v2180_v45  ;;  %2665 = vmatpush1.bf16.msra.mxu0 %v4388_v47 }
 0x249   :  { %2706 = vmatpush1.bf16.msra.mxu1 %v4390_v51  ;;  %2696 = vmatprep.mubr.bf16.mxu0 %v4605_v0 }
 0x24a   :  { %2737 = vmatprep.mubr.bf16.mxu1 %v4605_v0  ;;  %2746 = vmatprep.subr.bf16.mxu0 %v4393_v52 }
 0x24b   :  { %2787 = vmatprep.subr.bf16.mxu1 %v4395_v53 }
 0x24f   :  { %4404 = vmatmul.mubr.msk.bf16.vlgmr.msra.gmra.mrb[96].mxu0 %vm136_vm0, %v4644_v14 }
 0x250   :  { %4405 = vmatmul.mubr.msk.bf16.vlgmr.msra.gmra.mrb[96].mxu1 %vm136_vm0, %v4644_v14  ;;  %2747 = vmatpush1.bf16.msra.mxu0 %v4392_v55 }
 0x251   :  { %2788 = vmatpush1.bf16.msra.mxu1 %v4394_v57  ;;  %2778 = vmatprep.mubr.bf16.mxu0 %v4605_v0 }
 0x252   :  { %2819 = vmatprep.mubr.bf16.mxu1 %v4605_v0  ;;  %2828 = vmatprep.subr.bf16.mxu0 %v4397_v16 }
 0x253   :  { %2869 = vmatprep.subr.bf16.mxu1 %v4399_v25 }
 0x257   :  { %4406 = vmatmul.mubr.msk.bf16.vlgmr.msra.gmra.mrb[100].mxu0 %vm136_vm0, %v4644_v14 }
 0x258   :  { %4407 = vmatmul.mubr.msk.bf16.vlgmr.msra.gmra.mrb[100].mxu1 %vm136_vm0, %v4644_v14  ;;  %2829 = vmatpush1.bf16.msra.mxu0 %v4396_v61 }
 0x259   :  { %2870 = vmatpush1.bf16.msra.mxu1 %v4398_v1  ;;  %2860 = vmatprep.mubr.bf16.mxu0 %v4605_v0 }
 0x25a   :  { %2901 = vmatprep.mubr.bf16.mxu1 %v4605_v0  ;;  %2910 = vmatprep.subr.bf16.mxu0 %v4401_v2 }
 0x25b   :  { %2951 = vmatprep.subr.bf16.mxu1 %v4403_v3  ;;  %v2580_v3 = vld [vmem:[#allocation2 + $0x360] sm:$0x77] }
 0x25f   :  { %4408 = vmatmul.mubr.msk.bf16.vlgmr.msra.gmra.mrb[104].mxu0 %vm136_vm0, %v4644_v14 }
 0x260   :  { %4409 = vmatmul.mubr.msk.bf16.vlgmr.msra.gmra.mrb[104].mxu1 %vm136_vm0, %v4644_v14  ;;  %2911 = vmatpush1.bf16.msra.mxu0 %v4400_v23 }
 0x261   :  { %2952 = vmatpush1.bf16.msra.mxu1 %v4402_v4  ;;  %2942 = vmatprep.mubr.bf16.mxu0 %v4605_v0 }
 0x262   :  { %2983 = vmatprep.mubr.bf16.mxu1 %v4605_v0  ;;  %3080 = vmatprep.subr.bf16.mxu0 %v4413_v5 }
 0x263   :  { %3120 = vmatprep.subr.bf16.mxu1 %v4415_v7 }
 0x267   :  { %4410 = vmatmul.mubr.msk.bf16.vlgmr.msra.gmra.mrb[108].mxu0 %vm136_vm0, %v4644_v14 }
 0x268   :  { %4411 = vmatmul.mubr.msk.bf16.vlgmr.msra.gmra.mrb[108].mxu1 %vm136_vm0, %v4644_v14 }
 0x269   :  { %3081 = vmatpush1.bf16.xpose.msra.mxu0 %v4412_v34 }
 0x26a   :  { %3121 = vmatpush1.bf16.xpose.msra.mxu1 %v4414_v6  ;;  %3160 = vmatprep.subr.bf16.mxu0 %v4417_v12 }
 0x26b   :  { %3200 = vmatprep.subr.bf16.mxu1 %v4419_v13  ;;  %v4418_v13 = vcombine.low %v4816_v9, %v4816_v9 }
 0x302   :  { %v2272_v19 = vpop.f32.mrb[80].mxu0 }
 0x303   :  { %v2312_v31 = vpop.f32.mrb[80].mxu1  ;;  %v2274_v20 = vpop.f32.mrb[81].mxu0 }
 0x304   :  { %v2313_v11 = vadd.f32 %v2312_v31, %v2272_v19  ;;  %v2314_v32 = vpop.f32.mrb[81].mxu1  ;;  %v2275_v41 = vpop.f32.mrb[82].mxu0  ;;  %v4421_v19 = vcombine.high %v2580_v3, %v2580_v3  ;;  %v4423_v31 = vcombine.high %v2581_v33, %v2581_v33 }
 0x305   :  { %v2315_v21 = vpop.f32.mrb[82].mxu1  ;;  %v2276_v42 = vpop.f32.mrb[83].mxu0 }
 0x306   :  { %v2316_v22 = vpop.f32.mrb[83].mxu1 }
 0x30a   :  { %v2352_v27 = vpop.f32.mrb[84].mxu0 }
 0x30b   :  { %v2353_v28 = vadd.f32 %v2352_v27, %v2313_v11  ;;  %v2392_v29 = vpop.f32.mrb[84].mxu1  ;;  %v2354_v30 = vpop.f32.mrb[85].mxu0  ;;  %v2582_v27 = vld [vmem:[#allocation2 + $0x370] sm:$0x77] }
 0x30c   :  { %v2394_v35 = vpop.f32.mrb[85].mxu1  ;;  %v2355_v36 = vpop.f32.mrb[86].mxu0  ;;  %v2583_v30 = vld [vmem:[#allocation2 + $0x378] sm:$0x77] }
 0x30d   :  { %v2393_v37 = vadd.f32 %v2392_v29, %v2353_v28  ;;  %v2395_v38 = vpop.f32.mrb[86].mxu1  ;;  %v2356_v39 = vpop.f32.mrb[87].mxu0 }
 0x30e   :  { %v2396_v40 = vpop.f32.mrb[87].mxu1  ;;  %v4420_v38 = vcombine.low %v2580_v3, %v2580_v3 }
 0x312   :  { %v2432_v43 = vpop.f32.mrb[88].mxu0 }
 0x313   :  { %v2433_v44 = vadd.f32 %v2432_v43, %v2393_v37  ;;  %v2472_v17 = vpop.f32.mrb[88].mxu1  ;;  %v2434_v45 = vpop.f32.mrb[89].mxu0  ;;  %v4422_v43 = vcombine.low %v2581_v33, %v2581_v33 }
 0x314   :  { %v2474_v46 = vpop.f32.mrb[89].mxu1  ;;  %v2435_v18 = vpop.f32.mrb[90].mxu0 }
 0x315   :  { %v2473_v47 = vadd.f32 %v2472_v17, %v2433_v44  ;;  %v2475_v48 = vpop.f32.mrb[90].mxu1  ;;  %v2436_v49 = vpop.f32.mrb[91].mxu0  ;;  %v4425_v44 = vcombine.high %v2582_v27, %v2582_v27  ;;  %v4427_v17 = vcombine.high %v2583_v30, %v2583_v30 }
 0x316   :  { %v2476_v50 = vpop.f32.mrb[91].mxu1 }
 0x31a   :  { %v2512_v59 = vpop.f32.mrb[92].mxu0 }
 0x31b   :  { %v2513_v51 = vadd.f32 %v2512_v59, %v2473_v47  ;;  %v2552_v52 = vpop.f32.mrb[92].mxu1  ;;  %v2514_v53 = vpop.f32.mrb[93].mxu0 }
 0x31c   :  { %v2554_v60 = vpop.f32.mrb[93].mxu1  ;;  %v2515_v54 = vpop.f32.mrb[94].mxu0 }
 0x31d   :  { %v2553_v55 = vadd.f32 %v2552_v52, %v2513_v51  ;;  %v2555_v56 = vpop.f32.mrb[94].mxu1  ;;  %v2516_v15 = vpop.f32.mrb[95].mxu0  ;;  %v3402_v51 = vld [vmem:[#allocation2 + $0x100] sm:$0xff] }
 0x31e   :  { %v2556_v57 = vpop.f32.mrb[95].mxu1  ;;  %v3410_v52 = vld [vmem:[#allocation2 + $0x240] sm:$0xff]  ;;  %v3411_v56 = vld [vmem:[#allocation2 + $0x248] sm:$0xff] }
 0x31f   :  { %v4823_v16 = vadd.f32 %v2553_v55, %v4784_v10  ;;  %v4416_v10 = vcombine.low %v4814_v8, %v4814_v8  ;;  %v3403_v55 = vld [vmem:[#allocation2 + $0x108] sm:$0xff] }
 0x322   :  { %v2698_v25 = vpop.f32.mrb[96].mxu0 }
 0x323   :  { %v2992_v26 = vmax.f32 %v2698_v25, 0.0  ;;  %v2739_v58 = vpop.f32.mrb[96].mxu1  ;;  %v2700_v61 = vpop.f32.mrb[97].mxu0 }
 0x324   :  { %v2994_v62 = vmax.f32 %v2739_v58, 0.0  ;;  %v2993_v63 = vmax.f32 %v2700_v61, 0.0  ;;  %v2741_v1 = vpop.f32.mrb[97].mxu1  ;;  %v2702_v2 = vpop.f32.mrb[98].mxu0 }
 0x325   :  { %v2995_v23 = vmax.f32 %v2741_v1, 0.0  ;;  %v2743_v4 = vpop.f32.mrb[98].mxu1  ;;  %v2703_v24 = vpop.f32.mrb[99].mxu0  ;;  %v3008_v7 = vpack.c.bf16 %v2992_v26, %v2992_v26  ;;  %v4424_v26 = vcombine.low %v2582_v27, %v2582_v27  ;;  %v4431_v1 = vcombine.high %v3403_v55, %v3411_v56 }
 0x326   :  { %v3010_v34 = vpack.c.bf16 %v2994_v62, %v2994_v62  ;;  %v3009_v5 = vpack.c.bf16 %v2993_v63, %v2993_v63  ;;  %v2744_v6 = vpop.f32.mrb[99].mxu1  ;;  %v4426_v62 = vcombine.low %v2583_v30, %v2583_v30  ;;  %v4429_v63 = vcombine.high %v3402_v51, %v3410_v52  ;;  %v3407_v30 = vld [vmem:[#allocation2 + $0x128] sm:$0xff] }
 0x327   :  { %v3011_v12 = vpack.c.bf16 %v2995_v23, %v2995_v23 }
 0x328   :  { %3112 = vmatprep.mubr.bf16.mxu0 %v3009_v5 }
 0x329   :  { %3152 = vmatprep.mubr.bf16.mxu1 %v3011_v12  ;;  %3113 = vmatmul.mubr.bf16.vlgmr.msra.gmra.mrb[112].mxu0 %v3008_v7  ;;  %v3404_v12 = vld [vmem:[#allocation2 + $0x110] sm:$0xff] }
 0x32a   :  { %3153 = vmatmul.mubr.bf16.vlgmr.msra.gmra.mrb[112].mxu1 %v3010_v34  ;;  %v2780_v20 = vpop.f32.mrb[100].mxu0  ;;  %3161 = vmatpush1.bf16.xpose.msra.mxu0 %v4416_v10 }
 0x32b   :  { %v2996_v11 = vmax.f32 %v2780_v20, 0.0  ;;  %v2821_v32 = vpop.f32.mrb[100].mxu1  ;;  %3201 = vmatpush1.bf16.xpose.msra.mxu1 %v4418_v13  ;;  %v2782_v41 = vpop.f32.mrb[101].mxu0  ;;  %3240 = vmatprep.subr.bf16.mxu0 %v4421_v19  ;;  %v3412_v13 = vld [vmem:[#allocation2 + $0x250] sm:$0xff] }
 0x32c   :  { %v2998_v21 = vmax.f32 %v2821_v32, 0.0  ;;  %v2997_v8 = vmax.f32 %v2782_v41, 0.0  ;;  %v2823_v42 = vpop.f32.mrb[101].mxu1  ;;  %v2784_v22 = vpop.f32.mrb[102].mxu0  ;;  %3280 = vmatprep.subr.bf16.mxu1 %v4423_v31  ;;  %v3405_v32 = vld [vmem:[#allocation2 + $0x118] sm:$0xff] }
 0x32d   :  { %v2999_v9 = vmax.f32 %v2823_v42, 0.0  ;;  %v2825_v28 = vpop.f32.mrb[102].mxu1  ;;  %v2785_v29 = vpop.f32.mrb[103].mxu0  ;;  %v3012_v39 = vpack.c.bf16 %v2996_v11, %v2996_v11  ;;  %v4428_v11 = vcombine.low %v3402_v51, %v3410_v52  ;;  %v3413_v41 = vld [vmem:[#allocation2 + $0x258] sm:$0xff]  ;;  %v4430_v42 = vcombine.low %v3403_v55, %v3411_v56 }
 0x32e   :  { %v3014_v35 = vpack.c.bf16 %v2998_v21, %v2998_v21  ;;  %v3013_v36 = vpack.c.bf16 %v2997_v8, %v2997_v8  ;;  %v2826_v37 = vpop.f32.mrb[103].mxu1  ;;  %v4433_v22 = vcombine.high %v3404_v12, %v3412_v13  ;;  %v4435_v27 = vcombine.high %v3405_v32, %v3413_v41  ;;  %v3414_v28 = vld [vmem:[#allocation2 + $0x260] sm:$0xff] }
 0x32f   :  { %v3015_v40 = vpack.c.bf16 %v2999_v9, %v2999_v9  ;;  %v3406_v9 = vld [vmem:[#allocation2 + $0x120] sm:$0xff]  ;;  %v4432_v29 = vcombine.low %v3404_v12, %v3412_v13 }
 0x330   :  { %3192 = vmatprep.mubr.bf16.mxu0 %v3013_v36  ;;  %v4434_v36 = vcombine.low %v3405_v32, %v3413_v41  ;;  %v4437_v37 = vcombine.high %v3406_v9, %v3414_v28 }
 0x331   :  { %3232 = vmatprep.mubr.bf16.mxu1 %v3015_v40  ;;  %3193 = vmatmul.mubr.bf16.vlgmr.msra.gmra.mrb[116].mxu0 %v3012_v39  ;;  %v3408_v39 = vld [vmem:[#allocation2 + $0x130] sm:$0xff] }
 0x332   :  { %3233 = vmatmul.mubr.bf16.vlgmr.msra.gmra.mrb[116].mxu1 %v3014_v35  ;;  %v2862_v45 = vpop.f32.mrb[104].mxu0  ;;  %3241 = vmatpush1.bf16.xpose.msra.mxu0 %v4420_v38  ;;  %v3415_v35 = vld [vmem:[#allocation2 + $0x268] sm:$0xff]  ;;  %v3416_v40 = vld [vmem:[#allocation2 + $0x270] sm:$0xff] }
 0x333   :  { %v3000_v46 = vmax.f32 %v2862_v45, 0.0  ;;  %v2903_v18 = vpop.f32.mrb[104].mxu1  ;;  %3281 = vmatpush1.bf16.xpose.msra.mxu1 %v4422_v43  ;;  %v2864_v47 = vpop.f32.mrb[105].mxu0  ;;  %3320 = vmatprep.subr.bf16.mxu0 %v4425_v44  ;;  %v4439_v38 = vcombine.high %v3407_v30, %v3415_v35  ;;  %v4436_v43 = vcombine.low %v3406_v9, %v3414_v28  ;;  %v3409_v44 = vld [vmem:[#allocation2 + $0x138] sm:$0xff]  ;;  %v4438_v45 = vcombine.low %v3407_v30, %v3415_v35 }
 0x334   :  { %v3002_v48 = vmax.f32 %v2903_v18, 0.0  ;;  %v3001_v49 = vmax.f32 %v2864_v47, 0.0  ;;  %v2905_v50 = vpop.f32.mrb[105].mxu1  ;;  %v2866_v59 = vpop.f32.mrb[106].mxu0  ;;  %3360 = vmatprep.subr.bf16.mxu1 %v4427_v17  ;;  %v3417_v17 = vld [vmem:[#allocation2 + $0x278] sm:$0xff]  ;;  %v4440_v47 = vcombine.low %v3408_v39, %v3416_v40 }
 0x335   :  { %v3003_v53 = vmax.f32 %v2905_v50, 0.0  ;;  %v2907_v60 = vpop.f32.mrb[106].mxu1  ;;  %v2867_v54 = vpop.f32.mrb[107].mxu0  ;;  %v3016_v58 = vpack.c.bf16 %v3000_v46, %v3000_v46  ;;  %v4441_v46 = vcombine.high %v3408_v39, %v3416_v40  ;;  %v4443_v18 = vcombine.high %v3409_v44, %v3417_v17  ;;  %v3419_v50 = vld [vmem:[#allocation2 + $0x388] sm:$0x77] }
 0x336   :  { %v3018_v15 = vpack.c.bf16 %v3002_v48, %v3002_v48  ;;  %v3017_v57 = vpack.c.bf16 %v3001_v49, %v3001_v49  ;;  %v2908_v25 = vpop.f32.mrb[107].mxu1  ;;  %v4442_v48 = vcombine.low %v3409_v44, %v3417_v17  ;;  %v3418_v49 = vld [vmem:[#allocation2 + $0x380] sm:$0x77]  ;;  %v4454_v52 = vcombine.low %v3419_v50, %v3419_v50  ;;  %v4853_v60 = vld [vmem:[#allocation2 + $0x390] sm:$0x77] }
 0x337   :  { %v3019_v61 = vpack.c.bf16 %v3003_v53, %v3003_v53  ;;  %v4452_v59 = vcombine.low %v3418_v49, %v3418_v49  ;;  %v4453_v51 = vcombine.high %v3418_v49, %v3418_v49  ;;  %v4455_v53 = vcombine.high %v3419_v50, %v3419_v50  ;;  %v4855_v54 = vld [vmem:[#allocation2 + $0x398] sm:$0x77] }
 0x338   :  { %3272 = vmatprep.mubr.bf16.mxu0 %v3017_v57 }
 0x339   :  { %3312 = vmatprep.mubr.bf16.mxu1 %v3019_v61  ;;  %3273 = vmatmul.mubr.bf16.vlgmr.msra.gmra.mrb[120].mxu0 %v3016_v58 }
 0x33a   :  { %3313 = vmatmul.mubr.bf16.vlgmr.msra.gmra.mrb[120].mxu1 %v3018_v15  ;;  %v2944_v2 = vpop.f32.mrb[108].mxu0  ;;  %3321 = vmatpush1.bf16.xpose.msra.mxu0 %v4424_v26 }
 0x33b   :  { %v3004_v3 = vmax.f32 %v2944_v2, 0.0  ;;  %v2985_v23 = vpop.f32.mrb[108].mxu1  ;;  %3361 = vmatpush1.bf16.xpose.msra.mxu1 %v4426_v62  ;;  %v2946_v4 = vpop.f32.mrb[109].mxu0  ;;  %3506 = vmatprep.subr.bf16.mxu0 %v4429_v63 }
 0x33c   :  { %v3006_v24 = vmax.f32 %v2985_v23, 0.0  ;;  %v3005_v33 = vmax.f32 %v2946_v4, 0.0  ;;  %v2987_v34 = vpop.f32.mrb[109].mxu1  ;;  %v2948_v5 = vpop.f32.mrb[110].mxu0  ;;  %3547 = vmatprep.subr.bf16.mxu1 %v4431_v1 }
 0x33d   :  { %v3007_v6 = vmax.f32 %v2987_v34, 0.0  ;;  %v2989_v10 = vpop.f32.mrb[110].mxu1  ;;  %v2949_v7 = vpop.f32.mrb[111].mxu0  ;;  %v3020_v21 = vpack.c.bf16 %v3004_v3, %v3004_v3 }
 0x33e   :  { %v3022_v19 = vpack.c.bf16 %v3006_v24, %v3006_v24  ;;  %v3021_v31 = vpack.c.bf16 %v3005_v33, %v3005_v33  ;;  %v2990_v20 = vpop.f32.mrb[111].mxu1 }
 0x33f   :  { %v3023_v8 = vpack.c.bf16 %v3007_v6, %v3007_v6 }
 0x340   :  { %3352 = vmatprep.mubr.bf16.mxu0 %v3021_v31 }
 0x341   :  { %3392 = vmatprep.mubr.bf16.mxu1 %v3023_v8  ;;  %3353 = vmatmul.mubr.bf16.vlgmr.msra.gmra.mrb[124].mxu0 %v3020_v21 }
 0x342   :  { %3393 = vmatmul.mubr.bf16.vlgmr.msra.gmra.mrb[124].mxu1 %v3022_v19  ;;  %3507 = vmatpush1.bf16.msra.mxu0 %v4428_v11 }
 0x343   :  { %3548 = vmatpush1.bf16.msra.mxu1 %v4430_v42  ;;  %3538 = vmatprep.mubr.bf16.mxu0 %v4605_v0 }
 0x344   :  { %3579 = vmatprep.mubr.bf16.mxu1 %v4605_v0  ;;  %3588 = vmatprep.subr.bf16.mxu0 %v4433_v22 }
 0x345   :  { %3629 = vmatprep.subr.bf16.mxu1 %v4435_v27 }
 0x349   :  { %4444 = vmatmul.mubr.msk.bf16.vlgmr.msra.gmra.mrb[128].mxu0 %vm136_vm0, %v4644_v14 }
 0x34a   :  { %4445 = vmatmul.mubr.msk.bf16.vlgmr.msra.gmra.mrb[128].mxu1 %vm136_vm0, %v4644_v14  ;;  %3589 = vmatpush1.bf16.msra.mxu0 %v4432_v29 }
 0x34b   :  { %3630 = vmatpush1.bf16.msra.mxu1 %v4434_v36  ;;  %3620 = vmatprep.mubr.bf16.mxu0 %v4605_v0 }
 0x34c   :  { %3661 = vmatprep.mubr.bf16.mxu1 %v4605_v0  ;;  %3670 = vmatprep.subr.bf16.mxu0 %v4437_v37 }
 0x34d   :  { %3711 = vmatprep.subr.bf16.mxu1 %v4439_v38 }
 0x351   :  { %4446 = vmatmul.mubr.msk.bf16.vlgmr.msra.gmra.mrb[132].mxu0 %vm136_vm0, %v4644_v14 }
 0x352   :  { %4447 = vmatmul.mubr.msk.bf16.vlgmr.msra.gmra.mrb[132].mxu1 %vm136_vm0, %v4644_v14  ;;  %3671 = vmatpush1.bf16.msra.mxu0 %v4436_v43 }
 0x353   :  { %3712 = vmatpush1.bf16.msra.mxu1 %v4438_v45  ;;  %3702 = vmatprep.mubr.bf16.mxu0 %v4605_v0  ;;  %v3422_v45 = vld [vmem:[#allocation2 + $0x3a0] sm:$0x77] }
 0x354   :  { %3743 = vmatprep.mubr.bf16.mxu1 %v4605_v0  ;;  %3752 = vmatprep.subr.bf16.mxu0 %v4441_v46 }
 0x355   :  { %3793 = vmatprep.subr.bf16.mxu1 %v4443_v18 }
 0x359   :  { %4448 = vmatmul.mubr.msk.bf16.vlgmr.msra.gmra.mrb[136].mxu0 %vm136_vm0, %v4644_v14 }
 0x35a   :  { %4449 = vmatmul.mubr.msk.bf16.vlgmr.msra.gmra.mrb[136].mxu1 %vm136_vm0, %v4644_v14  ;;  %3753 = vmatpush1.bf16.msra.mxu0 %v4440_v47 }
 0x35b   :  { %3794 = vmatpush1.bf16.msra.mxu1 %v4442_v48  ;;  %3784 = vmatprep.mubr.bf16.mxu0 %v4605_v0  ;;  %v3423_v48 = vld [vmem:[#allocation2 + $0x3a8] sm:$0x77] }
 0x35c   :  { %3825 = vmatprep.mubr.bf16.mxu1 %v4605_v0  ;;  %3922 = vmatprep.subr.bf16.mxu0 %v4453_v51  ;;  %v4457_v0 = vcombine.high %v4853_v60, %v4853_v60 }
 0x35d   :  { %3962 = vmatprep.subr.bf16.mxu1 %v4455_v53  ;;  %v4458_v53 = vcombine.low %v4855_v54, %v4855_v54 }
 0x361   :  { %4450 = vmatmul.mubr.msk.bf16.vlgmr.msra.gmra.mrb[140].mxu0 %vm136_vm0, %v4644_v14 }
 0x362   :  { %4451 = vmatmul.mubr.msk.bf16.vlgmr.msra.gmra.mrb[140].mxu1 %vm136_vm0, %v4644_v14  ;;  %v4459_v14 = vcombine.high %v4855_v54, %v4855_v54 }
 0x363   :  { %3923 = vmatpush1.bf16.xpose.msra.mxu0 %v4452_v59 }
 0x364   :  { %3963 = vmatpush1.bf16.xpose.msra.mxu1 %v4454_v52  ;;  %4002 = vmatprep.subr.bf16.mxu0 %v4457_v0  ;;  %v4461_v0 = vcombine.high %v3422_v45, %v3422_v45 }
 0x365   :  { %4042 = vmatprep.subr.bf16.mxu1 %v4459_v14  ;;  %v4463_v14 = vcombine.high %v3423_v48, %v3423_v48 }
 0x3fc   :  { %v3114_v55 = vpop.f32.mrb[112].mxu0 }
 0x3fd   :  { %v3154_v56 = vpop.f32.mrb[112].mxu1  ;;  %v3116_v15 = vpop.f32.mrb[113].mxu0 }
 0x3fe   :  { %v3155_v57 = vadd.f32 %v3154_v56, %v3114_v55  ;;  %v3156_v25 = vpop.f32.mrb[113].mxu1  ;;  %v3117_v26 = vpop.f32.mrb[114].mxu0 }
 0x3ff   :  { %v3157_v58 = vpop.f32.mrb[114].mxu1  ;;  %v3118_v61 = vpop.f32.mrb[115].mxu0 }
 0x400   :  { %v3158_v62 = vpop.f32.mrb[115].mxu1  ;;  %v3424_v61 = vld [vmem:[#allocation2 + $0x3b0] sm:$0x77] }
 0x404   :  { %v3194_v63 = vpop.f32.mrb[116].mxu0 }
 0x405   :  { %v3195_v1 = vadd.f32 %v3194_v63, %v3155_v57  ;;  %v3234_v2 = vpop.f32.mrb[116].mxu1  ;;  %v3196_v3 = vpop.f32.mrb[117].mxu0 }
 0x406   :  { %v3236_v23 = vpop.f32.mrb[117].mxu1  ;;  %v3197_v4 = vpop.f32.mrb[118].mxu0 }
 0x407   :  { %v3235_v24 = vadd.f32 %v3234_v2, %v3195_v1  ;;  %v3237_v33 = vpop.f32.mrb[118].mxu1  ;;  %v3198_v34 = vpop.f32.mrb[119].mxu0  ;;  %v3425_v1 = vld [vmem:[#allocation2 + $0x3b8] sm:$0x77]  ;;  %v4460_v4 = vcombine.low %v3422_v45, %v3422_v45 }
 0x408   :  { %v3238_v5 = vpop.f32.mrb[119].mxu1  ;;  %v4462_v34 = vcombine.low %v3423_v48, %v3423_v48 }
 0x409   :  { %v4465_v5 = vcombine.high %v3424_v61, %v3424_v61 }
 0x40c   :  { %v3274_v6 = vpop.f32.mrb[120].mxu0 }
 0x40d   :  { %v3275_v10 = vadd.f32 %v3274_v6, %v3235_v24  ;;  %v3314_v7 = vpop.f32.mrb[120].mxu1  ;;  %v3276_v12 = vpop.f32.mrb[121].mxu0  ;;  %v4467_v6 = vcombine.high %v3425_v1, %v3425_v1 }
 0x40e   :  { %v3316_v13 = vpop.f32.mrb[121].mxu1  ;;  %v3277_v19 = vpop.f32.mrb[122].mxu0 }
 0x40f   :  { %v3315_v31 = vadd.f32 %v3314_v7, %v3275_v10  ;;  %v3317_v20 = vpop.f32.mrb[122].mxu1  ;;  %v3278_v11 = vpop.f32.mrb[123].mxu0 }
 0x410   :  { %v3318_v32 = vpop.f32.mrb[123].mxu1 }
 0x414   :  { %v3354_v41 = vpop.f32.mrb[124].mxu0 }
 0x415   :  { %v3355_v21 = vadd.f32 %v3354_v41, %v3315_v31  ;;  %v3394_v8 = vpop.f32.mrb[124].mxu1  ;;  %v3356_v42 = vpop.f32.mrb[125].mxu0 }
 0x416   :  { %v3396_v22 = vpop.f32.mrb[125].mxu1  ;;  %v3357_v27 = vpop.f32.mrb[126].mxu0 }
 0x417   :  { %v3395_v9 = vadd.f32 %v3394_v8, %v3355_v21  ;;  %v3397_v28 = vpop.f32.mrb[126].mxu1  ;;  %v3358_v29 = vpop.f32.mrb[127].mxu0  ;;  %v4464_v27 = vcombine.low %v3424_v61, %v3424_v61 }
 0x418   :  { %v3398_v30 = vpop.f32.mrb[127].mxu1  ;;  %v4466_v29 = vcombine.low %v3425_v1, %v3425_v1 }
 0x419   :  { %v4862_v35 = vadd.f32 %v3395_v9, %v4823_v16  ;;  %v4456_v16 = vcombine.low %v4853_v60, %v4853_v60 }
 0x41c   :  { %v3540_v36 = vpop.f32.mrb[128].mxu0 }
 0x41d   :  { %v3834_v37 = vmax.f32 %v3540_v36, 0.0  ;;  %v3581_v38 = vpop.f32.mrb[128].mxu1  ;;  %v3542_v39 = vpop.f32.mrb[129].mxu0 }
 0x41e   :  { %v3836_v40 = vmax.f32 %v3581_v38, 0.0  ;;  %v3835_v43 = vmax.f32 %v3542_v39, 0.0  ;;  %v3583_v44 = vpop.f32.mrb[129].mxu1  ;;  %v3544_v17 = vpop.f32.mrb[130].mxu0 }
 0x41f   :  { %v3837_v46 = vmax.f32 %v3583_v44, 0.0  ;;  %v3585_v18 = vpop.f32.mrb[130].mxu1  ;;  %v3545_v47 = vpop.f32.mrb[131].mxu0  ;;  %v3850_v51 = vpack.c.bf16 %v3834_v37, %v3834_v37 }
 0x420   :  { %v3852_v49 = vpack.c.bf16 %v3836_v40, %v3836_v40  ;;  %v3851_v50 = vpack.c.bf16 %v3835_v43, %v3835_v43  ;;  %v3586_v59 = vpop.f32.mrb[131].mxu1 }
 0x421   :  { %v3853_v52 = vpack.c.bf16 %v3837_v46, %v3837_v46 }
 0x422   :  { %3954 = vmatprep.mubr.bf16.mxu0 %v3851_v50 }
 0x423   :  { %3994 = vmatprep.mubr.bf16.mxu1 %v3853_v52  ;;  %3955 = vmatmul.mubr.bf16.vlgmr.msra.gmra.mrb[144].mxu0 %v3850_v51 }
 0x424   :  { %3995 = vmatmul.mubr.bf16.vlgmr.msra.gmra.mrb[144].mxu1 %v3852_v49  ;;  %v3622_v55 = vpop.f32.mrb[132].mxu0  ;;  %4003 = vmatpush1.bf16.xpose.msra.mxu0 %v4456_v16 }
 0x425   :  { %v3838_v56 = vmax.f32 %v3622_v55, 0.0  ;;  %v3663_v15 = vpop.f32.mrb[132].mxu1  ;;  %4043 = vmatpush1.bf16.xpose.msra.mxu1 %v4458_v53  ;;  %v3624_v57 = vpop.f32.mrb[133].mxu0  ;;  %4082 = vmatprep.subr.bf16.mxu0 %v4461_v0 }
 0x426   :  { %v3840_v25 = vmax.f32 %v3663_v15, 0.0  ;;  %v3839_v60 = vmax.f32 %v3624_v57, 0.0  ;;  %v3665_v26 = vpop.f32.mrb[133].mxu1  ;;  %v3626_v58 = vpop.f32.mrb[134].mxu0  ;;  %4122 = vmatprep.subr.bf16.mxu1 %v4463_v14 }
 0x427   :  { %v3841_v54 = vmax.f32 %v3665_v26, 0.0  ;;  %v3667_v62 = vpop.f32.mrb[134].mxu1  ;;  %v3627_v63 = vpop.f32.mrb[135].mxu0  ;;  %v3854_v24 = vpack.c.bf16 %v3838_v56, %v3838_v56 }
 0x428   :  { %v3856_v2 = vpack.c.bf16 %v3840_v25, %v3840_v25  ;;  %v3855_v3 = vpack.c.bf16 %v3839_v60, %v3839_v60  ;;  %v3668_v23 = vpop.f32.mrb[135].mxu1 }
 0x429   :  { %v3857_v33 = vpack.c.bf16 %v3841_v54, %v3841_v54 }
 0x42a   :  { %4034 = vmatprep.mubr.bf16.mxu0 %v3855_v3 }
 0x42b   :  { %4074 = vmatprep.mubr.bf16.mxu1 %v3857_v33  ;;  %4035 = vmatmul.mubr.bf16.vlgmr.msra.gmra.mrb[148].mxu0 %v3854_v24 }
 0x42c   :  { %4075 = vmatmul.mubr.bf16.vlgmr.msra.gmra.mrb[148].mxu1 %v3856_v2  ;;  %v3704_v10 = vpop.f32.mrb[136].mxu0  ;;  %4083 = vmatpush1.bf16.xpose.msra.mxu0 %v4460_v4 }
 0x42d   :  { %v3842_v7 = vmax.f32 %v3704_v10, 0.0  ;;  %v3745_v12 = vpop.f32.mrb[136].mxu1  ;;  %4123 = vmatpush1.bf16.xpose.msra.mxu1 %v4462_v34  ;;  %v3706_v13 = vpop.f32.mrb[137].mxu0  ;;  %4162 = vmatprep.subr.bf16.mxu0 %v4465_v5 }
 0x42e   :  { %v3844_v19 = vmax.f32 %v3745_v12, 0.0  ;;  %v3843_v31 = vmax.f32 %v3706_v13, 0.0  ;;  %v3747_v20 = vpop.f32.mrb[137].mxu1  ;;  %v3708_v11 = vpop.f32.mrb[138].mxu0  ;;  %4202 = vmatprep.subr.bf16.mxu1 %v4467_v6 }
 0x42f   :  { %v3845_v32 = vmax.f32 %v3747_v20, 0.0  ;;  %v3749_v41 = vpop.f32.mrb[138].mxu1  ;;  %v3709_v21 = vpop.f32.mrb[139].mxu0  ;;  %v3858_v9 = vpack.c.bf16 %v3842_v7, %v3842_v7 }
 0x430   :  { %v3860_v8 = vpack.c.bf16 %v3844_v19, %v3844_v19  ;;  %v3859_v42 = vpack.c.bf16 %v3843_v31, %v3843_v31  ;;  %v3750_v22 = vpop.f32.mrb[139].mxu1  ;;  %v4468_v41 = vld [vmem:[%s4886_s2] ss:$0 sm:$0xff] }
 0x431   :  { %v3861_v28 = vpack.c.bf16 %v3845_v32, %v3845_v32 }
 0x432   :  { %4114 = vmatprep.mubr.bf16.mxu0 %v3859_v42 }
 0x433   :  { %4154 = vmatprep.mubr.bf16.mxu1 %v3861_v28  ;;  %4115 = vmatmul.mubr.bf16.vlgmr.msra.gmra.mrb[152].mxu0 %v3858_v9 }
 0x434   :  { %4155 = vmatmul.mubr.bf16.vlgmr.msra.gmra.mrb[152].mxu1 %v3860_v8  ;;  %v3786_v30 = vpop.f32.mrb[140].mxu0  ;;  %4163 = vmatpush1.bf16.xpose.msra.mxu0 %v4464_v27 }
 0x435   :  { %v3846_v36 = vmax.f32 %v3786_v30, 0.0  ;;  %v3827_v37 = vpop.f32.mrb[140].mxu1  ;;  %4203 = vmatpush1.bf16.xpose.msra.mxu1 %v4466_v29  ;;  %v3788_v38 = vpop.f32.mrb[141].mxu0 }
 0x436   :  { %v3848_v39 = vmax.f32 %v3827_v37, 0.0  ;;  %v3847_v40 = vmax.f32 %v3788_v38, 0.0  ;;  %v3829_v43 = vpop.f32.mrb[141].mxu1  ;;  %v3790_v44 = vpop.f32.mrb[142].mxu0 }
 0x437   :  { %v3849_v17 = vmax.f32 %v3829_v43, 0.0  ;;  %v3831_v45 = vpop.f32.mrb[142].mxu1  ;;  %v3791_v46 = vpop.f32.mrb[143].mxu0  ;;  %v3862_v49 = vpack.c.bf16 %v3846_v36, %v3846_v36 }
 0x438   :  { %v3864_v18 = vpack.c.bf16 %v3848_v39, %v3848_v39  ;;  %v3863_v47 = vpack.c.bf16 %v3847_v40, %v3847_v40  ;;  %v3832_v48 = vpop.f32.mrb[143].mxu1 }
 0x439   :  { %v3865_v50 = vpack.c.bf16 %v3849_v17, %v3849_v17 }
 0x43a   :  { %4194 = vmatprep.mubr.bf16.mxu0 %v3863_v47 }
 0x43b   :  { %4234 = vmatprep.mubr.bf16.mxu1 %v3865_v50  ;;  %4195 = vmatmul.mubr.bf16.vlgmr.msra.gmra.mrb[156].mxu0 %v3862_v49 }
 0x43c   :  { %4235 = vmatmul.mubr.bf16.vlgmr.msra.gmra.mrb[156].mxu1 %v3864_v18 }
 0x4f6   :  { %v3956_v59 = vpop.f32.mrb[144].mxu0 }
 0x4f7   :  { %v3996_v16 = vpop.f32.mrb[144].mxu1  ;;  %v3958_v51 = vpop.f32.mrb[145].mxu0 }
 0x4f8   :  { %v3997_v52 = vadd.f32 %v3996_v16, %v3956_v59  ;;  %v3998_v53 = vpop.f32.mrb[145].mxu1  ;;  %v3959_v0 = vpop.f32.mrb[146].mxu0 }
 0x4f9   :  { %v3999_v14 = vpop.f32.mrb[146].mxu1  ;;  %v3960_v55 = vpop.f32.mrb[147].mxu0 }
 0x4fa   :  { %v4000_v56 = vpop.f32.mrb[147].mxu1 }
 0x4fe   :  { %v4036_v15 = vpop.f32.mrb[148].mxu0 }
 0x4ff   :  { %v4037_v57 = vadd.f32 %v4036_v15, %v3997_v52  ;;  %v4076_v25 = vpop.f32.mrb[148].mxu1  ;;  %v4038_v60 = vpop.f32.mrb[149].mxu0 }
 0x500   :  { %v4078_v26 = vpop.f32.mrb[149].mxu1  ;;  %v4039_v58 = vpop.f32.mrb[150].mxu0 }
 0x501   :  { %v4077_v61 = vadd.f32 %v4076_v25, %v4037_v57  ;;  %v4079_v54 = vpop.f32.mrb[150].mxu1  ;;  %v4040_v62 = vpop.f32.mrb[151].mxu0 }
 0x502   :  { %v4080_v63 = vpop.f32.mrb[151].mxu1 }
 0x506   :  { %v4116_v1 = vpop.f32.mrb[152].mxu0 }
 0x507   :  { %v4117_v2 = vadd.f32 %v4116_v1, %v4077_v61  ;;  %v4156_v3 = vpop.f32.mrb[152].mxu1  ;;  %v4118_v23 = vpop.f32.mrb[153].mxu0 }
 0x508   :  { %v4158_v4 = vpop.f32.mrb[153].mxu1  ;;  %v4119_v24 = vpop.f32.mrb[154].mxu0 }
 0x509   :  { %v4157_v33 = vadd.f32 %v4156_v3, %v4117_v2  ;;  %v4159_v34 = vpop.f32.mrb[154].mxu1  ;;  %v4120_v5 = vpop.f32.mrb[155].mxu0 }
 0x50a   :  { %v4160_v6 = vpop.f32.mrb[155].mxu1 }
 0x50e   :  { %v4196_v10 = vpop.f32.mrb[156].mxu0 }
 0x50f   :  { %v4197_v7 = vadd.f32 %v4196_v10, %v4157_v33  ;;  %v4236_v12 = vpop.f32.mrb[156].mxu1  ;;  %v4198_v13 = vpop.f32.mrb[157].mxu0 }
 0x510   :  { %v4238_v19 = vpop.f32.mrb[157].mxu1  ;;  %v4199_v31 = vpop.f32.mrb[158].mxu0 }
 0x511   :  { %v4237_v20 = vadd.f32 %v4236_v12, %v4197_v7  ;;  %v4239_v11 = vpop.f32.mrb[158].mxu1  ;;  %v4200_v32 = vpop.f32.mrb[159].mxu0 }
 0x512   :  { %v4240_v21 = vpop.f32.mrb[159].mxu1 }
 0x513   :  { %v4242_v8 = vadd.f32 %v4237_v20, %v4862_v35 }
 0x515   :  { %v4250_v42 = vadd.f32 %v4468_v41, %v4242_v8 }
 0x517   :  { %4252 = vst.msk [vmem:[#allocation5] sm:$0x3] %vm4251_vm1, %v4250_v42 }
 0x518   :  { %4587 = shalt.err (!%p4584_p12)
}
 0x519   :  { %s4588_s2 = scalar_lea.hbm %s4887_s3, 32 }
 0x51a   :  { %p4589_p13 = scmp.ne.s32.totalorder %s4887_s3, %s4588_s2  ;;  %p4592_p0 = scmp.lt.u32.totalorder %s4588_s2, %s4887_s3 }
 0x51c   :  { %p4594_p1 = pnand %p4592_p0, %p4589_p13 }
 0x51e   :  { %4597 = shalt.err (!%p4594_p1)
}
 0x51f   :  { %4262 = dma.vmem_to_hbm [thread:$0]  %s4260_s29, 32, %s4887_s3, [#allocation4]  }
 0x520   :  { %4600 = dma.done.wait [#allocation4], 32  }
 0x521   :  { %4601 = vsyncadd [#allocation4], 4294967264 }
 0x522   :  { %4266 = vsyncpa [#allocation3], 1 }
 0x523   :  { %4267 = vsyncpa [#allocation4], 1 }

</bundles_post_ra>
